<compile_context>
chip_gen: v7x
topology: tpu7x:2x2x1
jax: 0.10.0
libtpu: 0.0.40
codegen_flags: <defaults>
</compile_context>

<pallas_src>
import math

import numpy as np
import jax
import jax.numpy as jnp
from jax.experimental import pallas as pl
from jax.experimental.pallas import tpu as pltpu  # noqa: F401  (TPU-specific tuning hooks)

# --- small, deterministic problem sizes consistent with the module -----------
LATENT = 32          # latent_size (768 in the real model)
HEADS = 4            # num_heads   (12 in the real model)
HEAD_DIM = LATENT // HEADS
SEQ = 8
BATCH = 2
BS = BATCH * SEQ
FF = 4 * LATENT
EPS = 1e-5           # nn.LayerNorm default eps
LANE = 128           # TPU vreg lane width: each head's q/k/v gets its own zero-padded band
NEG = -1e9           # additive mask value (exp underflows to exactly 0 in f32)
SHIFT = int(math.log2(SEQ))   # SEQ is a power of two -> batch id via right shift

# Row offsets inside the "D-wide" parameter slab (lane width = LATENT):
R_WO = 0                      # HEADS blocks of 128 rows (only first HEAD_DIM rows nonzero)
R_W2 = HEADS * LANE           # w2: FF rows
R_VEC = R_W2 + FF             # 8-row block of gains / biases
WD_ROWS = R_VEC + 8
QKV_ROWS = 40                 # weight rows 0:LATENT, bias row LATENT, sublane pad to 40


# --- in-kernel helpers --------------------------------------------------------
def _layernorm(x, g, b):
    # one-pass mean / mean-of-squares: the two cross-lane reduces are independent
    mu = jnp.mean(x, axis=-1, keepdims=True)
    ms = jnp.mean(x * x, axis=-1, keepdims=True)
    var = ms - mu * mu
    return (x - mu) * jax.lax.rsqrt(var + EPS) * g + b


def _gelu_tanh(x):
    # tanh-approximate GELU: transcendental goes to the EUP slot.
    c = math.sqrt(2.0 / math.pi)
    return 0.5 * x * (1.0 + jnp.tanh(c * (x + 0.044715 * x * x * x)))


# --- the Pallas kernel: whole encoder block, all batch elements at once ------
def encoder_kernel(x_ref, wqkv_ref, wd_ref, wf_ref, out_ref):
    x = x_ref[...]                                           # (BS, D)

    # Block-diagonal additive mask built in-kernel (batch folded into rows).
    row = jax.lax.broadcasted_iota(jnp.int32, (BS, BS), 0)
    col = jax.lax.broadcasted_iota(jnp.int32, (BS, BS), 1)
    same_batch = (row >> SHIFT) == (col >> SHIFT)
    neg_mask = jnp.where(same_batch, 0.0, NEG).astype(jnp.float32)

    # Gains / biases: one sublane-aligned 8-row block load, then static row picks.
    vecs = wd_ref[R_VEC:R_VEC + 8, :]                        # (8, D)
    ln0_g, ln0_b = vecs[0:1, :], vecs[1:2, :]
    ln1_g, ln1_b = vecs[2:3, :], vecs[3:4, :]
    bo, b2 = vecs[4:5, :], vecs[5:6, :]

    # 1) LayerNorm 0
    xn = _layernorm(x, ln0_g, ln0_b)

    # 2) Multi-head self-attention (dropout = identity).
    #    Per-head q/k/v live in zero-padded 128-lane bands -> all slices below are
    #    lane-tile aligned; zero padding contributes nothing to any contraction.
    #    1/sqrt(head_dim) is folded into the Q weights/bias.  Head outputs are
    #    accumulated straight into the output projection (no concat).
    r0 = x + bo                                              # residual + out-proj bias
    for h in range(HEADS):                                   # static 4-way unrolled loop
        base = 3 * h * LANE
        w_h = wqkv_ref[0:LATENT, base:base + 3 * LANE]               # (D, 384) view
        b_h = wqkv_ref[LATENT:LATENT + 1, base:base + 3 * LANE]      # (1, 384) view
        qkv = jnp.dot(xn, w_h, preferred_element_type=jnp.float32) + b_h  # (BS, 384)
        qh = qkv[:, 0 * LANE:1 * LANE]
        kh = qkv[:, 1 * LANE:2 * LANE]
        vh = qkv[:, 2 * LANE:3 * LANE]
        # NT matmul (no explicit transpose); logits are tiny (folded scale +
        # layernormed input) so the max-subtraction stabilization is dropped.
        scores = jax.lax.dot_general(
            qh, kh, (((1,), (1,)), ((), ())),
            preferred_element_type=jnp.float32) + neg_mask           # (BS, BS)
        probs = jnp.exp(scores)
        denom = jnp.sum(probs, axis=-1, keepdims=True)
        pv = jnp.dot(probs, vh, preferred_element_type=jnp.float32)  # (BS, 128)
        pv = pv * pl.reciprocal(denom, approx=True)   # normalize after PV (EUP divide)
        wo_h = wd_ref[R_WO + h * LANE:R_WO + (h + 1) * LANE, :]      # (128, D) view
        r0 = r0 + jnp.dot(pv, wo_h, preferred_element_type=jnp.float32)

    # 4) LayerNorm 1
    xn2 = _layernorm(r0, ln1_g, ln1_b)

    # 5) MLP: Linear -> GELU -> (Dropout) -> Linear -> (Dropout)
    w1 = wf_ref[0:LATENT, :]
    b1 = wf_ref[LATENT:LATENT + 1, :]
    h1 = jnp.dot(xn2, w1, preferred_element_type=jnp.float32) + b1   # (BS, FF)
    h1 = _gelu_tanh(h1)
    w2 = wd_ref[R_W2:R_W2 + FF, :]                                    # (FF, D) view
    ff = jnp.dot(h1, w2, preferred_element_type=jnp.float32) + b2

    # 6) Residual connection #2
    out_ref[...] = r0 + ff
    # TODO(synk): at real-model scale (D=768, FF=3072) switch weights to bf16, add a
    # token-tile grid with dimension_semantics=("parallel",...) (dual TC on v7x) and
    # tile FF (<=1024) with an f32 VMEM accumulator sized for v7x's 64 MiB VMEM.


# --- one-time parameter packing: 16 raw tensors -> 3 contiguous DMA slabs ----
def fuse_params(p):
    scale = 1.0 / math.sqrt(HEAD_DIM)
    D, F, H, HD = LATENT, FF, HEADS, HEAD_DIM
    wq = np.asarray(p["wq"], np.float32) * scale
    bq = np.asarray(p["bq"], np.float32) * scale
    wk, bk = np.asarray(p["wk"], np.float32), np.asarray(p["bk"], np.float32)
    wv, bv = np.asarray(p["wv"], np.float32), np.asarray(p["bv"], np.float32)

    # Slab A: fused QKV, head-major 128-lane bands (q,k,v per head), bias row at LATENT.
    qkv_slab = np.zeros((QKV_ROWS, H * 3 * LANE), np.float32)
    for h in range(H):
        cols = slice(h * HD, (h + 1) * HD)
        for c, (w, b) in enumerate(((wq, bq), (wk, bk), (wv, bv))):
            off = (3 * h + c) * LANE
            qkv_slab[0:D, off:off + HD] = w[:, cols]
            qkv_slab[D, off:off + HD] = b[0, cols]

    # Slab B (lane width D): wo as HEADS zero-padded 128-row blocks, w2, gains/biases.
    wd_slab = np.zeros((WD_ROWS, D), np.float32)
    wo = np.asarray(p["wo"], np.float32)
    for h in range(H):
        wd_slab[R_WO + h * LANE:R_WO + h * LANE + HD, :] = wo[h * HD:(h + 1) * HD, :]
    wd_slab[R_W2:R_W2 + F, :] = np.asarray(p["w2"], np.float32)
    wd_slab[R_VEC + 0, :] = np.asarray(p["ln0_g"], np.float32)[0]
    wd_slab[R_VEC + 1, :] = np.asarray(p["ln0_b"], np.float32)[0]
    wd_slab[R_VEC + 2, :] = np.asarray(p["ln1_g"], np.float32)[0]
    wd_slab[R_VEC + 3, :] = np.asarray(p["ln1_b"], np.float32)[0]
    wd_slab[R_VEC + 4, :] = np.asarray(p["bo"], np.float32)[0]
    wd_slab[R_VEC + 5, :] = np.asarray(p["b2"], np.float32)[0]

    # Slab C (lane width FF): MLP up-projection + its bias row.
    wf_slab = np.zeros((QKV_ROWS, F), np.float32)
    wf_slab[0:D, :] = np.asarray(p["w1"], np.float32)
    wf_slab[D, :] = np.asarray(p["b1"], np.float32)[0]

    return jnp.asarray(qkv_slab), jnp.asarray(wd_slab), jnp.asarray(wf_slab)


# --- jitted wrapper -----------------------------------------------------------
@jax.jit
def encoder_forward(x, qkv_slab, wd_slab, wf_slab):
    B, S, D = x.shape
    x2 = x.reshape(B * S, D)                                 # fold batch into rows (free)
    out = pl.pallas_call(
        encoder_kernel,
        out_shape=jax.ShapeDtypeStruct((B * S, D), jnp.float32),
    )(x2, qkv_slab, wd_slab, wf_slab)
    return out.reshape(B, S, D)


# --- deterministic parameter init (weights stored as (in, out), i.e. W.T) ----
def make_params(key):
    ks = jax.random.split(key, 16)
    rnd = lambda k, shape, s: jax.random.normal(k, shape, jnp.float32) * s
    D, F = LATENT, FF
    return {
        "ln0_g": jnp.ones((1, D), jnp.float32),
        "ln0_b": jnp.zeros((1, D), jnp.float32),
        "wq": rnd(ks[0], (D, D), 0.05), "wk": rnd(ks[1], (D, D), 0.05),
        "wv": rnd(ks[2], (D, D), 0.05),
        "bq": rnd(ks[3], (1, D), 0.02), "bk": rnd(ks[4], (1, D), 0.02),
        "bv": rnd(ks[5], (1, D), 0.02),
        "wo": rnd(ks[6], (D, D), 0.05), "bo": rnd(ks[7], (1, D), 0.02),
        "ln1_g": jnp.ones((1, D), jnp.float32),
        "ln1_b": jnp.zeros((1, D), jnp.float32),
        "w1": rnd(ks[8], (D, F), 0.05), "b1": rnd(ks[9], (1, F), 0.02),
        "w2": rnd(ks[10], (F, D), 0.05), "b2": rnd(ks[11], (1, D), 0.02),
    }


# --- pure-JAX reference (exact erf GELU, per-batch attention) ------------------
def encoder_ref(x, p):
    def ln(v, g, b):
        mu = v.mean(-1, keepdims=True)
        var = ((v - mu) ** 2).mean(-1, keepdims=True)
        return (v - mu) / jnp.sqrt(var + EPS) * g + b

    outs = []
    for bi in range(x.shape[0]):
        xb = x[bi]
        xn = ln(xb, p["ln0_g"], p["ln0_b"])
        q = xn @ p["wq"] + p["bq"]
        k = xn @ p["wk"] + p["bk"]
        v = xn @ p["wv"] + p["bv"]
        heads = []
        for h in range(HEADS):
            sl = slice(h * HEAD_DIM, (h + 1) * HEAD_DIM)
            sc = (q[:, sl] @ k[:, sl].T) / math.sqrt(HEAD_DIM)
            pr = jax.nn.softmax(sc, axis=-1)
            heads.append(pr @ v[:, sl])
        attn = jnp.concatenate(heads, axis=-1) @ p["wo"] + p["bo"]
        r0 = xb + attn
        xn2 = ln(r0, p["ln1_g"], p["ln1_b"])
        h1 = xn2 @ p["w1"] + p["b1"]
        h1 = 0.5 * h1 * (1.0 + jax.scipy.special.erf(h1 / math.sqrt(2.0)))
        ff = h1 @ p["w2"] + p["b2"]
        outs.append(r0 + ff)
    return jnp.stack(outs, axis=0)


if __name__ == "__main__":
    key = jax.random.PRNGKey(0)
    kx, kp = jax.random.split(key)
    x = jax.random.normal(kx, (BATCH, SEQ, LATENT), jnp.float32)
    params = make_params(kp)
    slabs = fuse_params(params)            # one-time param packing (3 DMA slabs)

    out = encoder_forward(x, *slabs)
    out = jax.block_until_ready(out)

    ref = encoder_ref(x, params)
    assert out.shape == x.shape
    assert jnp.allclose(out, ref, atol=1e-3, rtol=1e-3), "mismatch vs reference"
    print("KERNEL_OK")
</pallas_src>

<mosaic_0001>
module attributes {stable_mosaic.version = 11 : i64} {
  func.func @encoder_kernel(%arg0: memref<16x32xf32, #tpu.memory_space<vmem>>, %arg1: memref<40x1536xf32, #tpu.memory_space<vmem>>, %arg2: memref<648x32xf32, #tpu.memory_space<vmem>>, %arg3: memref<40x128xf32, #tpu.memory_space<vmem>>, %arg4: memref<16x32xf32, #tpu.memory_space<vmem>>) attributes {dimension_semantics = [], scalar_prefetch = 0 : i64, scratch_operands = 0 : i64, tpu.core_type = #tpu.core_type<tc>} {
    %c0 = arith.constant 0 : index
    %c0_0 = arith.constant 0 : index
    %0 = vector.load %arg0[%c0, %c0_0] : memref<16x32xf32, #tpu.memory_space<vmem>>, vector<16x32xf32>
    %1 = tpu.iota {dimensions = array<i32: 0>} : vector<16x16xi32>
    %2 = tpu.iota {dimensions = array<i32: 1>} : vector<16x16xi32>
    %c3_i32 = arith.constant 3 : i32
    %3 = vector.broadcast %c3_i32 : i32 to vector<16x16xi32>
    %4 = arith.shrsi %1, %3 : vector<16x16xi32>
    %c3_i32_1 = arith.constant 3 : i32
    %5 = vector.broadcast %c3_i32_1 : i32 to vector<16x16xi32>
    %6 = arith.shrsi %2, %5 : vector<16x16xi32>
    %7 = arith.cmpi eq, %4, %6 : vector<16x16xi32>
    %cst = arith.constant 0.000000e+00 : f32
    %cst_2 = arith.constant -1.000000e+09 : f32
    %8 = vector.broadcast %cst : f32 to vector<16x16xf32>
    %9 = vector.broadcast %cst_2 : f32 to vector<16x16xf32>
    %10 = arith.select %7, %8, %9 : vector<16x16xi1>, vector<16x16xf32>
    %c640 = arith.constant 640 : index
    %c0_3 = arith.constant 0 : index
    %11 = vector.load %arg2[%c640, %c0_3] : memref<648x32xf32, #tpu.memory_space<vmem>>, vector<8x32xf32>
    %12 = vector.extract_strided_slice %11 {offsets = [0, 0], sizes = [1, 32], strides = [1, 1]} : vector<8x32xf32> to vector<1x32xf32>
    %13 = vector.extract_strided_slice %11 {offsets = [1, 0], sizes = [1, 32], strides = [1, 1]} : vector<8x32xf32> to vector<1x32xf32>
    %14 = vector.extract_strided_slice %11 {offsets = [2, 0], sizes = [1, 32], strides = [1, 1]} : vector<8x32xf32> to vector<1x32xf32>
    %15 = vector.extract_strided_slice %11 {offsets = [3, 0], sizes = [1, 32], strides = [1, 1]} : vector<8x32xf32> to vector<1x32xf32>
    %16 = vector.extract_strided_slice %11 {offsets = [4, 0], sizes = [1, 32], strides = [1, 1]} : vector<8x32xf32> to vector<1x32xf32>
    %17 = vector.extract_strided_slice %11 {offsets = [5, 0], sizes = [1, 32], strides = [1, 1]} : vector<8x32xf32> to vector<1x32xf32>
    %cst_4 = arith.constant dense<0.000000e+00> : vector<16xf32>
    %18 = vector.multi_reduction <add>, %0, %cst_4 [1] : vector<16x32xf32> to vector<16xf32>
    %19 = vector.shape_cast %18 : vector<16xf32> to vector<16x1xf32>
    %cst_5 = arith.constant 3.200000e+01 : f32
    %20 = vector.broadcast %cst_5 : f32 to vector<16x1xf32>
    %21 = arith.divf %19, %20 : vector<16x1xf32>
    %22 = arith.mulf %0, %0 : vector<16x32xf32>
    %cst_6 = arith.constant dense<0.000000e+00> : vector<16xf32>
    %23 = vector.multi_reduction <add>, %22, %cst_6 [1] : vector<16x32xf32> to vector<16xf32>
    %24 = vector.shape_cast %23 : vector<16xf32> to vector<16x1xf32>
    %cst_7 = arith.constant 3.200000e+01 : f32
    %25 = vector.broadcast %cst_7 : f32 to vector<16x1xf32>
    %26 = arith.divf %24, %25 : vector<16x1xf32>
    %27 = arith.mulf %21, %21 : vector<16x1xf32>
    %28 = arith.subf %26, %27 : vector<16x1xf32>
    %29 = vector.broadcast %21 : vector<16x1xf32> to vector<16x32xf32>
    %30 = arith.subf %0, %29 : vector<16x32xf32>
    %cst_8 = arith.constant 9.99999974E-6 : f32
    %31 = vector.broadcast %cst_8 : f32 to vector<16x1xf32>
    %32 = arith.addf %28, %31 : vector<16x1xf32>
    %33 = math.rsqrt %32 : vector<16x1xf32>
    %34 = vector.broadcast %33 : vector<16x1xf32> to vector<16x32xf32>
    %35 = arith.mulf %30, %34 : vector<16x32xf32>
    %36 = vector.broadcast %12 : vector<1x32xf32> to vector<16x32xf32>
    %37 = arith.mulf %35, %36 : vector<16x32xf32>
    %38 = vector.broadcast %13 : vector<1x32xf32> to vector<16x32xf32>
    %39 = arith.addf %37, %38 : vector<16x32xf32>
    %40 = vector.broadcast %16 : vector<1x32xf32> to vector<16x32xf32>
    %41 = arith.addf %0, %40 : vector<16x32xf32>
    %c0_9 = arith.constant 0 : index
    %c0_10 = arith.constant 0 : index
    %42 = vector.load %arg1[%c0_9, %c0_10] : memref<40x1536xf32, #tpu.memory_space<vmem>>, vector<32x384xf32>
    %c32 = arith.constant 32 : index
    %c0_11 = arith.constant 0 : index
    %43 = vector.load %arg1[%c32, %c0_11] : memref<40x1536xf32, #tpu.memory_space<vmem>>, vector<1x384xf32>
    %cst_12 = arith.constant dense<0.000000e+00> : vector<16x384xf32>
    %44 = tpu.matmul %39, %42, %cst_12 {dimension_numbers = #tpu.dot_dimension_numbers<[1], [0], [0], [1], [0, 0, 1, 1], [], []>} : vector<16x32xf32>, vector<32x384xf32>, vector<16x384xf32> -> vector<16x384xf32>
    %45 = vector.broadcast %43 : vector<1x384xf32> to vector<16x384xf32>
    %46 = arith.addf %44, %45 : vector<16x384xf32>
    %47 = vector.extract_strided_slice %46 {offsets = [0, 0], sizes = [16, 128], strides = [1, 1]} : vector<16x384xf32> to vector<16x128xf32>
    %48 = vector.extract_strided_slice %46 {offsets = [0, 128], sizes = [16, 128], strides = [1, 1]} : vector<16x384xf32> to vector<16x128xf32>
    %49 = vector.extract_strided_slice %46 {offsets = [0, 256], sizes = [16, 128], strides = [1, 1]} : vector<16x384xf32> to vector<16x128xf32>
    %cst_13 = arith.constant dense<0.000000e+00> : vector<16x16xf32>
    %50 = tpu.matmul %47, %48, %cst_13 {dimension_numbers = #tpu.dot_dimension_numbers<[1], [1], [0], [0], [0, 0, 1, 0], [], []>} : vector<16x128xf32>, vector<16x128xf32>, vector<16x16xf32> -> vector<16x16xf32>
    %51 = arith.addf %50, %10 : vector<16x16xf32>
    %52 = math.exp %51 : vector<16x16xf32>
    %cst_14 = arith.constant dense<0.000000e+00> : vector<16xf32>
    %53 = vector.multi_reduction <add>, %52, %cst_14 [1] : vector<16x16xf32> to vector<16xf32>
    %54 = vector.shape_cast %53 : vector<16xf32> to vector<16x1xf32>
    %cst_15 = arith.constant dense<0.000000e+00> : vector<16x128xf32>
    %55 = tpu.matmul %52, %49, %cst_15 {dimension_numbers = #tpu.dot_dimension_numbers<[1], [0], [0], [1], [0, 0, 1, 1], [], []>} : vector<16x16xf32>, vector<16x128xf32>, vector<16x128xf32> -> vector<16x128xf32>
    %56 = tpu.reciprocal %54 {approx = true} : vector<16x1xf32> -> vector<16x1xf32>
    %57 = vector.broadcast %56 : vector<16x1xf32> to vector<16x128xf32>
    %58 = arith.mulf %55, %57 : vector<16x128xf32>
    %c0_16 = arith.constant 0 : index
    %c0_17 = arith.constant 0 : index
    %59 = vector.load %arg2[%c0_16, %c0_17] : memref<648x32xf32, #tpu.memory_space<vmem>>, vector<128x32xf32>
    %cst_18 = arith.constant dense<0.000000e+00> : vector<16x32xf32>
    %60 = tpu.matmul %58, %59, %cst_18 {dimension_numbers = #tpu.dot_dimension_numbers<[1], [0], [0], [1], [0, 0, 1, 1], [], []>} : vector<16x128xf32>, vector<128x32xf32>, vector<16x32xf32> -> vector<16x32xf32>
    %61 = arith.addf %41, %60 : vector<16x32xf32>
    %c0_19 = arith.constant 0 : index
    %c384 = arith.constant 384 : index
    %62 = vector.load %arg1[%c0_19, %c384] : memref<40x1536xf32, #tpu.memory_space<vmem>>, vector<32x384xf32>
    %c32_20 = arith.constant 32 : index
    %c384_21 = arith.constant 384 : index
    %63 = vector.load %arg1[%c32_20, %c384_21] : memref<40x1536xf32, #tpu.memory_space<vmem>>, vector<1x384xf32>
    %cst_22 = arith.constant dense<0.000000e+00> : vector<16x384xf32>
    %64 = tpu.matmul %39, %62, %cst_22 {dimension_numbers = #tpu.dot_dimension_numbers<[1], [0], [0], [1], [0, 0, 1, 1], [], []>} : vector<16x32xf32>, vector<32x384xf32>, vector<16x384xf32> -> vector<16x384xf32>
    %65 = vector.broadcast %63 : vector<1x384xf32> to vector<16x384xf32>
    %66 = arith.addf %64, %65 : vector<16x384xf32>
    %67 = vector.extract_strided_slice %66 {offsets = [0, 0], sizes = [16, 128], strides = [1, 1]} : vector<16x384xf32> to vector<16x128xf32>
    %68 = vector.extract_strided_slice %66 {offsets = [0, 128], sizes = [16, 128], strides = [1, 1]} : vector<16x384xf32> to vector<16x128xf32>
    %69 = vector.extract_strided_slice %66 {offsets = [0, 256], sizes = [16, 128], strides = [1, 1]} : vector<16x384xf32> to vector<16x128xf32>
    %cst_23 = arith.constant dense<0.000000e+00> : vector<16x16xf32>
    %70 = tpu.matmul %67, %68, %cst_23 {dimension_numbers = #tpu.dot_dimension_numbers<[1], [1], [0], [0], [0, 0, 1, 0], [], []>} : vector<16x128xf32>, vector<16x128xf32>, vector<16x16xf32> -> vector<16x16xf32>
    %71 = arith.addf %70, %10 : vector<16x16xf32>
    %72 = math.exp %71 : vector<16x16xf32>
    %cst_24 = arith.constant dense<0.000000e+00> : vector<16xf32>
    %73 = vector.multi_reduction <add>, %72, %cst_24 [1] : vector<16x16xf32> to vector<16xf32>
    %74 = vector.shape_cast %73 : vector<16xf32> to vector<16x1xf32>
    %cst_25 = arith.constant dense<0.000000e+00> : vector<16x128xf32>
    %75 = tpu.matmul %72, %69, %cst_25 {dimension_numbers = #tpu.dot_dimension_numbers<[1], [0], [0], [1], [0, 0, 1, 1], [], []>} : vector<16x16xf32>, vector<16x128xf32>, vector<16x128xf32> -> vector<16x128xf32>
    %76 = tpu.reciprocal %74 {approx = true} : vector<16x1xf32> -> vector<16x1xf32>
    %77 = vector.broadcast %76 : vector<16x1xf32> to vector<16x128xf32>
    %78 = arith.mulf %75, %77 : vector<16x128xf32>
    %c128 = arith.constant 128 : index
    %c0_26 = arith.constant 0 : index
    %79 = vector.load %arg2[%c128, %c0_26] : memref<648x32xf32, #tpu.memory_space<vmem>>, vector<128x32xf32>
    %cst_27 = arith.constant dense<0.000000e+00> : vector<16x32xf32>
    %80 = tpu.matmul %78, %79, %cst_27 {dimension_numbers = #tpu.dot_dimension_numbers<[1], [0], [0], [1], [0, 0, 1, 1], [], []>} : vector<16x128xf32>, vector<128x32xf32>, vector<16x32xf32> -> vector<16x32xf32>
    %81 = arith.addf %61, %80 : vector<16x32xf32>
    %c0_28 = arith.constant 0 : index
    %c768 = arith.constant 768 : index
    %82 = vector.load %arg1[%c0_28, %c768] : memref<40x1536xf32, #tpu.memory_space<vmem>>, vector<32x384xf32>
    %c32_29 = arith.constant 32 : index
    %c768_30 = arith.constant 768 : index
    %83 = vector.load %arg1[%c32_29, %c768_30] : memref<40x1536xf32, #tpu.memory_space<vmem>>, vector<1x384xf32>
    %cst_31 = arith.constant dense<0.000000e+00> : vector<16x384xf32>
    %84 = tpu.matmul %39, %82, %cst_31 {dimension_numbers = #tpu.dot_dimension_numbers<[1], [0], [0], [1], [0, 0, 1, 1], [], []>} : vector<16x32xf32>, vector<32x384xf32>, vector<16x384xf32> -> vector<16x384xf32>
    %85 = vector.broadcast %83 : vector<1x384xf32> to vector<16x384xf32>
    %86 = arith.addf %84, %85 : vector<16x384xf32>
    %87 = vector.extract_strided_slice %86 {offsets = [0, 0], sizes = [16, 128], strides = [1, 1]} : vector<16x384xf32> to vector<16x128xf32>
    %88 = vector.extract_strided_slice %86 {offsets = [0, 128], sizes = [16, 128], strides = [1, 1]} : vector<16x384xf32> to vector<16x128xf32>
    %89 = vector.extract_strided_slice %86 {offsets = [0, 256], sizes = [16, 128], strides = [1, 1]} : vector<16x384xf32> to vector<16x128xf32>
    %cst_32 = arith.constant dense<0.000000e+00> : vector<16x16xf32>
    %90 = tpu.matmul %87, %88, %cst_32 {dimension_numbers = #tpu.dot_dimension_numbers<[1], [1], [0], [0], [0, 0, 1, 0], [], []>} : vector<16x128xf32>, vector<16x128xf32>, vector<16x16xf32> -> vector<16x16xf32>
    %91 = arith.addf %90, %10 : vector<16x16xf32>
    %92 = math.exp %91 : vector<16x16xf32>
    %cst_33 = arith.constant dense<0.000000e+00> : vector<16xf32>
    %93 = vector.multi_reduction <add>, %92, %cst_33 [1] : vector<16x16xf32> to vector<16xf32>
    %94 = vector.shape_cast %93 : vector<16xf32> to vector<16x1xf32>
    %cst_34 = arith.constant dense<0.000000e+00> : vector<16x128xf32>
    %95 = tpu.matmul %92, %89, %cst_34 {dimension_numbers = #tpu.dot_dimension_numbers<[1], [0], [0], [1], [0, 0, 1, 1], [], []>} : vector<16x16xf32>, vector<16x128xf32>, vector<16x128xf32> -> vector<16x128xf32>
    %96 = tpu.reciprocal %94 {approx = true} : vector<16x1xf32> -> vector<16x1xf32>
    %97 = vector.broadcast %96 : vector<16x1xf32> to vector<16x128xf32>
    %98 = arith.mulf %95, %97 : vector<16x128xf32>
    %c256 = arith.constant 256 : index
    %c0_35 = arith.constant 0 : index
    %99 = vector.load %arg2[%c256, %c0_35] : memref<648x32xf32, #tpu.memory_space<vmem>>, vector<128x32xf32>
    %cst_36 = arith.constant dense<0.000000e+00> : vector<16x32xf32>
    %100 = tpu.matmul %98, %99, %cst_36 {dimension_numbers = #tpu.dot_dimension_numbers<[1], [0], [0], [1], [0, 0, 1, 1], [], []>} : vector<16x128xf32>, vector<128x32xf32>, vector<16x32xf32> -> vector<16x32xf32>
    %101 = arith.addf %81, %100 : vector<16x32xf32>
    %c0_37 = arith.constant 0 : index
    %c1152 = arith.constant 1152 : index
    %102 = vector.load %arg1[%c0_37, %c1152] : memref<40x1536xf32, #tpu.memory_space<vmem>>, vector<32x384xf32>
    %c32_38 = arith.constant 32 : index
    %c1152_39 = arith.constant 1152 : index
    %103 = vector.load %arg1[%c32_38, %c1152_39] : memref<40x1536xf32, #tpu.memory_space<vmem>>, vector<1x384xf32>
    %cst_40 = arith.constant dense<0.000000e+00> : vector<16x384xf32>
    %104 = tpu.matmul %39, %102, %cst_40 {dimension_numbers = #tpu.dot_dimension_numbers<[1], [0], [0], [1], [0, 0, 1, 1], [], []>} : vector<16x32xf32>, vector<32x384xf32>, vector<16x384xf32> -> vector<16x384xf32>
    %105 = vector.broadcast %103 : vector<1x384xf32> to vector<16x384xf32>
    %106 = arith.addf %104, %105 : vector<16x384xf32>
    %107 = vector.extract_strided_slice %106 {offsets = [0, 0], sizes = [16, 128], strides = [1, 1]} : vector<16x384xf32> to vector<16x128xf32>
    %108 = vector.extract_strided_slice %106 {offsets = [0, 128], sizes = [16, 128], strides = [1, 1]} : vector<16x384xf32> to vector<16x128xf32>
    %109 = vector.extract_strided_slice %106 {offsets = [0, 256], sizes = [16, 128], strides = [1, 1]} : vector<16x384xf32> to vector<16x128xf32>
    %cst_41 = arith.constant dense<0.000000e+00> : vector<16x16xf32>
    %110 = tpu.matmul %107, %108, %cst_41 {dimension_numbers = #tpu.dot_dimension_numbers<[1], [1], [0], [0], [0, 0, 1, 0], [], []>} : vector<16x128xf32>, vector<16x128xf32>, vector<16x16xf32> -> vector<16x16xf32>
    %111 = arith.addf %110, %10 : vector<16x16xf32>
    %112 = math.exp %111 : vector<16x16xf32>
    %cst_42 = arith.constant dense<0.000000e+00> : vector<16xf32>
    %113 = vector.multi_reduction <add>, %112, %cst_42 [1] : vector<16x16xf32> to vector<16xf32>
    %114 = vector.shape_cast %113 : vector<16xf32> to vector<16x1xf32>
    %cst_43 = arith.constant dense<0.000000e+00> : vector<16x128xf32>
    %115 = tpu.matmul %112, %109, %cst_43 {dimension_numbers = #tpu.dot_dimension_numbers<[1], [0], [0], [1], [0, 0, 1, 1], [], []>} : vector<16x16xf32>, vector<16x128xf32>, vector<16x128xf32> -> vector<16x128xf32>
    %116 = tpu.reciprocal %114 {approx = true} : vector<16x1xf32> -> vector<16x1xf32>
    %117 = vector.broadcast %116 : vector<16x1xf32> to vector<16x128xf32>
    %118 = arith.mulf %115, %117 : vector<16x128xf32>
    %c384_44 = arith.constant 384 : index
    %c0_45 = arith.constant 0 : index
    %119 = vector.load %arg2[%c384_44, %c0_45] : memref<648x32xf32, #tpu.memory_space<vmem>>, vector<128x32xf32>
    %cst_46 = arith.constant dense<0.000000e+00> : vector<16x32xf32>
    %120 = tpu.matmul %118, %119, %cst_46 {dimension_numbers = #tpu.dot_dimension_numbers<[1], [0], [0], [1], [0, 0, 1, 1], [], []>} : vector<16x128xf32>, vector<128x32xf32>, vector<16x32xf32> -> vector<16x32xf32>
    %121 = arith.addf %101, %120 : vector<16x32xf32>
    %cst_47 = arith.constant dense<0.000000e+00> : vector<16xf32>
    %122 = vector.multi_reduction <add>, %121, %cst_47 [1] : vector<16x32xf32> to vector<16xf32>
    %123 = vector.shape_cast %122 : vector<16xf32> to vector<16x1xf32>
    %cst_48 = arith.constant 3.200000e+01 : f32
    %124 = vector.broadcast %cst_48 : f32 to vector<16x1xf32>
    %125 = arith.divf %123, %124 : vector<16x1xf32>
    %126 = arith.mulf %121, %121 : vector<16x32xf32>
    %cst_49 = arith.constant dense<0.000000e+00> : vector<16xf32>
    %127 = vector.multi_reduction <add>, %126, %cst_49 [1] : vector<16x32xf32> to vector<16xf32>
    %128 = vector.shape_cast %127 : vector<16xf32> to vector<16x1xf32>
    %cst_50 = arith.constant 3.200000e+01 : f32
    %129 = vector.broadcast %cst_50 : f32 to vector<16x1xf32>
    %130 = arith.divf %128, %129 : vector<16x1xf32>
    %131 = arith.mulf %125, %125 : vector<16x1xf32>
    %132 = arith.subf %130, %131 : vector<16x1xf32>
    %133 = vector.broadcast %125 : vector<16x1xf32> to vector<16x32xf32>
    %134 = arith.subf %121, %133 : vector<16x32xf32>
    %cst_51 = arith.constant 9.99999974E-6 : f32
    %135 = vector.broadcast %cst_51 : f32 to vector<16x1xf32>
    %136 = arith.addf %132, %135 : vector<16x1xf32>
    %137 = math.rsqrt %136 : vector<16x1xf32>
    %138 = vector.broadcast %137 : vector<16x1xf32> to vector<16x32xf32>
    %139 = arith.mulf %134, %138 : vector<16x32xf32>
    %140 = vector.broadcast %14 : vector<1x32xf32> to vector<16x32xf32>
    %141 = arith.mulf %139, %140 : vector<16x32xf32>
    %142 = vector.broadcast %15 : vector<1x32xf32> to vector<16x32xf32>
    %143 = arith.addf %141, %142 : vector<16x32xf32>
    %c0_52 = arith.constant 0 : index
    %c0_53 = arith.constant 0 : index
    %144 = vector.load %arg3[%c0_52, %c0_53] : memref<40x128xf32, #tpu.memory_space<vmem>>, vector<32x128xf32>
    %c32_54 = arith.constant 32 : index
    %c0_55 = arith.constant 0 : index
    %145 = vector.load %arg3[%c32_54, %c0_55] : memref<40x128xf32, #tpu.memory_space<vmem>>, vector<1x128xf32>
    %cst_56 = arith.constant dense<0.000000e+00> : vector<16x128xf32>
    %146 = tpu.matmul %143, %144, %cst_56 {dimension_numbers = #tpu.dot_dimension_numbers<[1], [0], [0], [1], [0, 0, 1, 1], [], []>} : vector<16x32xf32>, vector<32x128xf32>, vector<16x128xf32> -> vector<16x128xf32>
    %147 = vector.broadcast %145 : vector<1x128xf32> to vector<16x128xf32>
    %148 = arith.addf %146, %147 : vector<16x128xf32>
    %cst_57 = arith.constant 5.000000e-01 : f32
    %149 = vector.broadcast %cst_57 : f32 to vector<16x128xf32>
    %150 = arith.mulf %149, %148 : vector<16x128xf32>
    %cst_58 = arith.constant 4.471500e-02 : f32
    %151 = vector.broadcast %cst_58 : f32 to vector<16x128xf32>
    %152 = arith.mulf %151, %148 : vector<16x128xf32>
    %153 = arith.mulf %152, %148 : vector<16x128xf32>
    %154 = arith.mulf %153, %148 : vector<16x128xf32>
    %155 = arith.addf %148, %154 : vector<16x128xf32>
    %cst_59 = arith.constant 0.797884583 : f32
    %156 = vector.broadcast %cst_59 : f32 to vector<16x128xf32>
    %157 = arith.mulf %156, %155 : vector<16x128xf32>
    %158 = math.tanh %157 : vector<16x128xf32>
    %cst_60 = arith.constant 1.000000e+00 : f32
    %159 = vector.broadcast %cst_60 : f32 to vector<16x128xf32>
    %160 = arith.addf %159, %158 : vector<16x128xf32>
    %161 = arith.mulf %150, %160 : vector<16x128xf32>
    %c512 = arith.constant 512 : index
    %c0_61 = arith.constant 0 : index
    %162 = vector.load %arg2[%c512, %c0_61] : memref<648x32xf32, #tpu.memory_space<vmem>>, vector<128x32xf32>
    %cst_62 = arith.constant dense<0.000000e+00> : vector<16x32xf32>
    %163 = tpu.matmul %161, %162, %cst_62 {dimension_numbers = #tpu.dot_dimension_numbers<[1], [0], [0], [1], [0, 0, 1, 1], [], []>} : vector<16x128xf32>, vector<128x32xf32>, vector<16x32xf32> -> vector<16x32xf32>
    %164 = vector.broadcast %17 : vector<1x32xf32> to vector<16x32xf32>
    %165 = arith.addf %163, %164 : vector<16x32xf32>
    %166 = arith.addf %121, %165 : vector<16x32xf32>
    %c0_63 = arith.constant 0 : index
    %c0_64 = arith.constant 0 : index
    %167 = vector.load %arg4[%c0_63, %c0_64] : memref<16x32xf32, #tpu.memory_space<vmem>>, vector<16x32xf32>
    tpu.vector_store %arg4[%c0_63, %c0_64], %166 {strides = array<i32>} : memref<16x32xf32, #tpu.memory_space<vmem>>, vector<16x32xf32>,
    return
  }
}

</mosaic_0001>

<bundles_post_ra>
// kernel: encoder_forward.1
= control target key start
LH: loop header
LB: loop body
LE: loop exit
PB: predicated region body
PF: predicated region fallthrough
CT: control target
= control target key end

     0   :  { %vm33_vm0 = vcmask 261120   ;;  %s3576_s0 = inlined_call_operand.vmem [shape: f32[16,32], index: 0, kind: input, shape index: {}]   ;;  %s3577_s1 = inlined_call_operand.vmem [shape: f32[40,1536], index: 1, kind: input, shape index: {}]   ;;  %s3578_s2 = inlined_call_operand.vmem [shape: f32[648,32], index: 2, kind: input, shape index: {}]   ;;  %s3579_s3 = inlined_call_operand.vmem [shape: f32[40,128], index: 3, kind: input, shape index: {}]   ;;  %s3580_s4 = inlined_call_operand.hbm [shape: f32[16,32], index: 4, kind: output, shape index: {}]  }
   0x1   :  { %v2985_v0 = vld [vmem:[%s3576_s0 + $0x8] sm:$0xff]  ;;  %v2990_v1 = vld [vmem:[%s3576_s0] sm:$0xff] }
   0x2   :  { %9 = vsyncpa [#allocation3], 0  ;;  %v37_v2 = vsel %vm33_vm0, %v2985_v0, 0.0  ;;  %v34_v3 = vsel %vm33_vm0, %v2990_v1, 0.0  ;;  %v44_v4 = vmul.f32 %v2985_v0, %v2985_v0  ;;  %v43_v5 = vmul.f32 %v2990_v1, %v2990_v1  ;;  %v84_v8 = vld [vmem:[%s3577_s1 + $0x8] sm:$0xff]  ;;  %v83_v11 = vld [vmem:[%s3577_s1] sm:$0xff] }
   0x3   :  { %38 = vadd.xlane.f32.xlu1 %v37_v2  ;;  %35 = vadd.xlane.f32.xlu0 %v34_v3  ;;  %v87_v9 = vld [vmem:[%s3577_s1 + $0x68] sm:$0xff]  ;;  %v86_v12 = vld [vmem:[%s3577_s1 + $0x60] sm:$0xff]  ;;  %v85_v13 = vld [vmem:[%s3577_s1 + $0x10] sm:$0xff]  ;;  %v2952_v26 = vmov 0.0   ;;  %v20_v39 = vlaneseq  ;;  %vm350_vm3 = vcmask 130048  }
   0x4   :  { %v48_v6 = vsel %vm33_vm0, %v44_v4, 0.0  ;;  %v45_v7 = vsel %vm33_vm0, %v43_v5, 0.0  ;;  %v2604_v10 = vpack.c.bf16 %v87_v9, %v84_v8  ;;  %v2606_v14 = vpack.c.bf16 %v86_v12, %v83_v11  ;;  %v88_v15 = vld [vmem:[%s3577_s1 + $0x70] sm:$0xff]  ;;  %v90_v17 = vld [vmem:[%s3577_s1 + $0xc8] sm:$0xff]  ;;  %v89_v20 = vld [vmem:[%s3577_s1 + $0xc0] sm:$0xff]  ;;  %183 = vmatprep.mubr.f32.mxu0 %v2952_v26 }
   0x5   :  { %v2612_v16 = vpack.c.bf16 %v88_v15, %v85_v13  ;;  %v93_v18 = vld [vmem:[%s3577_s1 + $0x128] sm:$0xff]  ;;  %v92_v21 = vld [vmem:[%s3577_s1 + $0x120] sm:$0xff]  ;;  %v91_v22 = vld [vmem:[%s3577_s1 + $0xd0] sm:$0xff]  ;;  %v3040_v42 = vshrl.u32 %v20_v39, 7 }
   0x6   :  { %2605 = vmatprep.subr.bf16.mxu0 %v2604_v10  ;;  %v2608_v19 = vpack.c.bf16 %v93_v18, %v90_v17  ;;  %v2610_v23 = vpack.c.bf16 %v92_v21, %v89_v20  ;;  %v94_v24 = vld [vmem:[%s3577_s1 + $0x130] sm:$0xff]  ;;  %v3048_v44 = vld [vmem:[%s3578_s2 + $0x280] sm:$0xff]  ;;  %v535_v15 = vld [vmem:[%s3577_s1 + $0x18] sm:$0xff] }
   0x7   :  { %49 = vadd.xlane.f32.xlu1 %v48_v6  ;;  %46 = vadd.xlane.f32.xlu0 %v45_v7  ;;  %v2616_v25 = vpack.c.bf16 %v94_v24, %v91_v22  ;;  %v3043_v43 = vsub.s32 0, %v3040_v42  ;;  %v3051_v45 = vsub.s32 1, %v3040_v42  ;;  %v2135_v58 = vld [vmem:[%s3577_s1 + $0x180] ss:$8 sm:$0x7]  ;;  %v3076_v59 = vsub.s32 2, %v3040_v42 }
   0x8   :  { %2607 = vmatpush1.bf16.msra.mxu0 %v2606_v14  ;;  %2613 = vmatprep.subr.bf16.mxu1 %v2612_v16  ;;  %v536_v9 = vld [vmem:[%s3577_s1 + $0x20] sm:$0xff]  ;;  %v541_v22 = vld [vmem:[%s3577_s1 + $0xd8] sm:$0xff]  ;;  %v537_v24 = vld [vmem:[%s3577_s1 + $0x28] sm:$0xff] }
   0x9   :  { %2615 = vmatpush3.bf16.msra.mxu1 %v2612_v16  ;;  %2609 = vmatprep.subr.bf16.mxu0 %v2608_v19  ;;  %v68_v47 = vrot.slane %v3048_v44, %v3043_v43  ;;  %v74_v51 = vrot.slane %v3048_v44, %v3051_v45  ;;  %v101_v60 = vrot.slane %v2135_v58, %v3043_v43  ;;  %v539_v10 = vld [vmem:[%s3577_s1 + $0x80] sm:$0xff]  ;;  %v538_v16 = vld [vmem:[%s3577_s1 + $0x78] sm:$0xff] }
   0xa   :  { %2617 = vmatprep.subr.bf16.mxu1 %v2616_v25  ;;  %v109_v61 = vrot.slane %v2135_v58, %v3076_v59  ;;  %v105_v2 = vrot.slane %v2135_v58, %v3051_v45  ;;  %v2660_v14 = vpack.c.bf16 %v539_v10, %v536_v9  ;;  %v542_v17 = vld [vmem:[%s3577_s1 + $0xe0] sm:$0xff]  ;;  %v2662_v19 = vpack.c.bf16 %v538_v16, %v535_v15  ;;  %v445_v15 = vld [vmem:[%s3578_s2 + $0x18] sm:$0xff] }
   0xb   :  { %v545_v18 = vld [vmem:[%s3577_s1 + $0x140] sm:$0xff] }
   0xc   :  { %2611 = vmatpush1.bf16.msra.mxu0 %v2610_v23  ;;  %v2664_v21 = vpack.c.bf16 %v545_v18, %v542_v17  ;;  %v544_v23 = vld [vmem:[%s3577_s1 + $0x138] sm:$0xff]  ;;  %v446_v17 = vld [vmem:[%s3578_s2 + $0x20] sm:$0xff]  ;;  %v447_v18 = vld [vmem:[%s3578_s2 + $0x28] sm:$0xff] }
   0xd   :  { %2619 = vmatpush3.bf16.msra.mxu1 %v2616_v25  ;;  %v540_v25 = vld [vmem:[%s3577_s1 + $0x88] sm:$0xff] }
  0x90   :  { %v39_v27 = vpop.xlane.xlu1 %38  ;;  %v36_v28 = vpop.xlane.xlu0 %35 }
  0x91   :  { %v42_v29 = vmul.f32 0.03125, %v39_v27  ;;  %v41_v30 = vmul.f32 0.03125, %v36_v28  ;;  %v2666_v27 = vpack.c.bf16 %v544_v23, %v541_v22  ;;  %v2668_v28 = vpack.c.bf16 %v540_v25, %v537_v24  ;;  %v450_v23 = vld [vmem:[%s3578_s2 + $0x40] sm:$0xff]  ;;  %v451_v24 = vld [vmem:[%s3578_s2 + $0x48] sm:$0xff] }
  0x92   :  { %v2644_v25 = vpack.c.bf16 %v451_v24, %v450_v23  ;;  %v891_v23 = vld [vmem:[%s3578_s2 + $0xa0] sm:$0xff]  ;;  %v892_v24 = vld [vmem:[%s3578_s2 + $0xa8] sm:$0xff] }
  0x93   :  { %v54_v31 = vmul.f32 %v42_v29, %v42_v29  ;;  %v53_v34 = vmul.f32 %v41_v30, %v41_v30  ;;  %v58_v46 = vsub.f32 %v2985_v0, %v42_v29  ;;  %v57_v49 = vsub.f32 %v2990_v1, %v41_v30  ;;  %v543_v29 = vld [vmem:[%s3577_s1 + $0xe8] sm:$0xff] }
  0x94   :  { %v50_v32 = vpop.xlane.xlu1 %49  ;;  %v47_v33 = vpop.xlane.xlu0 %46  ;;  %v546_v30 = vld [vmem:[%s3577_s1 + $0x148] sm:$0xff] }
  0x95   :  { %v52_v35 = vmul.f32 0.03125, %v50_v32  ;;  %v51_v36 = vmul.f32 0.03125, %v47_v33  ;;  %v22_v32 = vadd.s32 8, %v3040_v42  ;;  %v24_v33 = vand.u32 127, %v20_v39 }
  0x96   :  { %v2142_v39 = vld [vmem:[%s3577_s1 + $0x198] ss:$8 sm:$0x7] }
  0x97   :  { %v56_v37 = vsub.f32 %v52_v35, %v54_v31  ;;  %v55_v38 = vsub.f32 %v51_v36, %v53_v34  ;;  %v2672_v31 = vpack.c.bf16 %v546_v30, %v543_v29  ;;  %v26_v34 = vshra.s32 %v22_v32, 3  ;;  %v454_v30 = vld [vmem:[%s3578_s2 + $0x60] sm:$0xff] }
  0x98   :  { %v27_v35 = vshra.s32 %v24_v33, 3  ;;  %v25_v36 = vshra.s32 %v3040_v42, 3  ;;  %v456_v33 = vld [vmem:[%s3578_s2 + $0x70] sm:$0xff] }
  0x99   :  { %v60_v40 = vadd.f32 1e-05, %v56_v37  ;;  %v59_v41 = vadd.f32 1e-05, %v55_v38  ;;  %v2953_v37 = vmov -1e+09  }
  0x9a   :  { %vm29_vm1 = vcmp.eq.s32.totalorder %v26_v34, %v27_v35  ;;  %vm28_vm2 = vcmp.eq.s32.totalorder %v25_v36, %v27_v35  ;;  %v457_v34 = vld [vmem:[%s3578_s2 + $0x78] sm:$0xff] }
  0x9b   :  { %2881 = vrsqrt.f32 %v60_v40  ;;  %v3130_v38 = vsel %vm29_vm1, 0.0, %v2953_v37  ;;  %v3132_v40 = vsel %vm28_vm2, 0.0, %v2953_v37  ;;  %v2656_v35 = vpack.c.bf16 %v457_v34, %v456_v33  ;;  %v981_v36 = vld [vmem:[%s3577_s1 + $0x38] sm:$0xff]  ;;  %v897_v33 = vld [vmem:[%s3578_s2 + $0xd0] sm:$0xff] }
  0x9c   :  { %2883 = vrsqrt.f32 %v59_v41  ;;  %v984_v37 = vld [vmem:[%s3577_s1 + $0x98] sm:$0xff] }
  0x9d   :  { %v898_v34 = vld [vmem:[%s3578_s2 + $0xd8] sm:$0xff] }
  0xa5   :  { %v2882_v48 = vpop.eup %2881 }
  0xa6   :  { %v2884_v50 = vpop.eup %2883  ;;  %v64_v52 = vmul.f32 %v2882_v48, %v58_v46 }
  0xa7   :  { %v63_v53 = vmul.f32 %v2884_v50, %v57_v49 }
  0xa8   :  { %v70_v54 = vmul.f32 %v68_v47, %v64_v52 }
  0xa9   :  { %v69_v55 = vmul.f32 %v68_v47, %v63_v53 }
  0xaa   :  { %v3059_v56 = vadd.f32 %v74_v51, %v70_v54 }
  0xab   :  { %v3061_v57 = vadd.f32 %v74_v51, %v69_v55  ;;  %v553_v51 = vrot.slane %v2142_v39, %v3043_v43  ;;  %v557_v55 = vrot.slane %v2142_v39, %v3051_v45 }
  0xad   :  { %2136 = vmatmul.mubr.msk.f32.vlgmr.msra.gmra.mrb[0].mxu0 %vm33_vm0, %v3061_v57  ;;  %2326 = vmatprep.mubr.msk.f32.mxu1 %vm33_vm0, %v3061_v57 }
  0xae   :  { %2327 = vmatmul.mubr.msk.f32.vlgmr.msra.gmra.mrb[0].mxu1 %vm33_vm0, %v3059_v56  ;;  %189 = vmatprep.mubr.f32.mxu0 %v2952_v26 }
  0xb1   :  { %2137 = vmatmul.mubr.msk.f32.gmra.mrb[2].mxu0 %vm33_vm0, %v3059_v56 }
 0x180   :  { %v185_v62 = vpop.f32.mrb[0].mxu0 }
 0x181   :  { %v186_v63 = vadd.f32 %v185_v62, %v101_v60  ;;  %v187_v0 = vpop.f32.mrb[1].mxu0  ;;  %v2328_v1 = vpop.f32.mrb[0].mxu1 }
 0x182   :  { %v268_v3 = vadd.f32 %v2328_v1, %v109_v61  ;;  %v262_v4 = vpop.f32.mrb[1].mxu1  ;;  %v188_v11 = vadd.f32 %v187_v0, %v105_v2 }
 0x183   :  { %v263_v5 = vadd.f32 %v262_v4, %v109_v61  ;;  %2333 = vmatprep.mubr.f32.mxu0 %v186_v63  ;;  %v561_v61 = vrot.slane %v2142_v39, %v3076_v59 }
 0x184   :  { %v191_v6 = vpop.f32.mrb[2].mxu0 }
 0x185   :  { %v2624_v7 = vpack.c.bf16 %v268_v3, %v263_v5  ;;  %v193_v8 = vpop.f32.mrb[3].mxu0  ;;  %v192_v20 = vadd.f32 %v191_v6, %v101_v60 }
 0x186   :  { %v194_v12 = vadd.f32 %v193_v8, %v105_v2 }
 0x187   :  { %2625 = vmatprep.subr.bf16.mxu1 %v2624_v7 }
 0x188   :  { %v2620_v13 = vpack.c.bf16 %v194_v12, %v188_v11  ;;  %2627 = vmatpush3.bf16.msra.mxu1 %v2624_v7  ;;  %v442_v11 = vld [vmem:[%s3578_s2] sm:$0xff]  ;;  %v443_v12 = vld [vmem:[%s3578_s2 + $0x8] sm:$0xff] }
 0x18a   :  { %2621 = vmatprep.subr.bf16.mxu0 %v2620_v13 }
 0x18b   :  { %2623 = vmatpush3.bf16.xpose.msra.mxu0 %v2620_v13  ;;  %v444_v13 = vld [vmem:[%s3578_s2 + $0x10] sm:$0xff] }
 0x18c   :  { %2661 = vmatprep.subr.bf16.mxu0 %v2660_v14  ;;  %v2628_v14 = vpack.c.bf16 %v443_v12, %v442_v11  ;;  %v2632_v16 = vpack.c.bf16 %v445_v15, %v444_v13  ;;  %v985_v11 = vld [vmem:[%s3577_s1 + $0xa0] sm:$0xff] }
 0x18d   :  { %v991_v15 = vld [vmem:[%s3577_s1 + $0x160] sm:$0xff] }
 0x18e   :  { %2629 = vmatprep.subr.bf16.mxu1 %v2628_v14 }
 0x192   :  { %2334 = vmatmul.mubr.f32.vlgmr.msra.gmra.mrb[4].mxu0 %v192_v20  ;;  %v448_v20 = vld [vmem:[%s3578_s2 + $0x30] sm:$0xff] }
 0x193   :  { %2663 = vmatpush1.bf16.msra.mxu0 %v2662_v19  ;;  %629 = vmatprep.mubr.f32.mxu0 %v2952_v26  ;;  %v2636_v19 = vpack.c.bf16 %v447_v18, %v446_v17  ;;  %v887_v17 = vld [vmem:[%s3578_s2 + $0x80] sm:$0xff]  ;;  %v888_v18 = vld [vmem:[%s3578_s2 + $0x88] sm:$0xff] }
 0x194   :  { %2665 = vmatprep.subr.bf16.mxu0 %v2664_v21  ;;  %v449_v21 = vld [vmem:[%s3578_s2 + $0x38] sm:$0xff] }
 0x195   :  { %v2640_v22 = vpack.c.bf16 %v449_v21, %v448_v20  ;;  %v2684_v20 = vpack.c.bf16 %v888_v18, %v887_v17  ;;  %v890_v21 = vld [vmem:[%s3578_s2 + $0x98] sm:$0xff] }
 0x197   :  { %2667 = vmatpush1.bf16.msra.mxu0 %v2666_v27  ;;  %v452_v27 = vld [vmem:[%s3578_s2 + $0x50] sm:$0xff] }
 0x198   :  { %2669 = vmatprep.subr.bf16.mxu0 %v2668_v28 }
 0x19a   :  { %2143 = vmatmul.mubr.msk.f32.vlgmr.msra.gmra.mrb[6].mxu0 %vm33_vm0, %v3061_v57 }
 0x19b   :  { %2671 = vmatpush3.bf16.msra.mxu0 %v2668_v28  ;;  %635 = vmatprep.mubr.f32.mxu0 %v2952_v26  ;;  %v453_v28 = vld [vmem:[%s3578_s2 + $0x58] sm:$0xff] }
 0x19c   :  { %2673 = vmatprep.subr.bf16.mxu0 %v2672_v31  ;;  %v2648_v29 = vpack.c.bf16 %v453_v28, %v452_v27  ;;  %v893_v27 = vld [vmem:[%s3578_s2 + $0xb0] sm:$0xff]  ;;  %v894_v28 = vld [vmem:[%s3578_s2 + $0xb8] sm:$0xff] }
 0x19e   :  { %2144 = vmatmul.mubr.msk.f32.gmra.mrb[8].mxu0 %vm33_vm0, %v3059_v56 }
 0x19f   :  { %2675 = vmatpush3.bf16.msra.mxu0 %v2672_v31  ;;  %2386 = vmatprep.mubr.msk.f32.mxu0 %vm33_vm0, %v3061_v57  ;;  %v455_v31 = vld [vmem:[%s3578_s2 + $0x68] sm:$0xff] }
 0x1a0   :  { %v2652_v32 = vpack.c.bf16 %v455_v31, %v454_v30  ;;  %v895_v30 = vld [vmem:[%s3578_s2 + $0xc0] sm:$0xff]  ;;  %v896_v31 = vld [vmem:[%s3578_s2 + $0xc8] sm:$0xff] }
 0x1a2   :  { %2387 = vmatmul.mubr.msk.f32.vlgmr.msra.gmra.mrb[10].mxu0 %vm33_vm0, %v3059_v56 }
 0x265   :  { %v2335_v41 = vpop.f32.mrb[4].mxu0 }
 0x266   :  { %v343_v46 = vadd.f32 %v2335_v41, %v3130_v38  ;;  %v337_v47 = vpop.f32.mrb[5].mxu0  ;;  %v2716_v41 = vpack.c.bf16 %v984_v37, %v981_v36  ;;  %v899_v36 = vld [vmem:[%s3578_s2 + $0xe0] sm:$0xff]  ;;  %v900_v37 = vld [vmem:[%s3578_s2 + $0xe8] sm:$0xff] }
 0x267   :  { %v338_v48 = vadd.f32 %v337_v47, %v3132_v40 }
 0x268   :  { %v348_v49 = vmul.f32 1.442695, %v343_v46 }
 0x269   :  { %v346_v50 = vmul.f32 1.442695, %v338_v48 }
 0x26a   :  { %2885 = vpow2.f32 %v348_v49 }
 0x26b   :  { %2887 = vpow2.f32 %v346_v50 }
 0x26d   :  { %v631_v52 = vpop.f32.mrb[6].mxu0 }
 0x26e   :  { %v632_v53 = vadd.f32 %v631_v52, %v553_v51  ;;  %v633_v54 = vpop.f32.mrb[7].mxu0 }
 0x26f   :  { %v634_v62 = vadd.f32 %v633_v54, %v557_v55 }
 0x270   :  { %2393 = vmatprep.mubr.f32.mxu0 %v632_v53 }
 0x271   :  { %v637_v58 = vpop.f32.mrb[8].mxu0 }
 0x272   :  { %v639_v60 = vpop.f32.mrb[9].mxu0  ;;  %v638_v10 = vadd.f32 %v637_v58, %v553_v51 }
 0x273   :  { %v640_v63 = vadd.f32 %v639_v60, %v557_v55 }
 0x274   :  { %v2886_v0 = vpop.eup %2885 }
 0x275   :  { %v2888_v1 = vpop.eup %2887  ;;  %v2676_v2 = vpack.c.bf16 %v640_v63, %v634_v62  ;;  %v2388_v3 = vpop.f32.mrb[10].mxu0  ;;  %v354_v4 = vsel %vm350_vm3, %v2886_v0, 0.0  ;;  %v980_v62 = vld [vmem:[%s3577_s1 + $0x30] sm:$0xff] }
 0x276   :  { %v714_v5 = vadd.f32 %v2388_v3, %v561_v61  ;;  %355 = vadd.xlane.f32.xlu1 %v354_v4  ;;  %2340 = vmatprep.mubr.msk.f32.mxu1 %vm350_vm3, %v2888_v1  ;;  %v708_v6 = vpop.f32.mrb[11].mxu0  ;;  %v351_v7 = vsel %vm350_vm3, %v2888_v1, 0.0  ;;  %v983_v63 = vld [vmem:[%s3577_s1 + $0x90] sm:$0xff]  ;;  %v990_v1 = vld [vmem:[%s3577_s1 + $0x158] sm:$0xff] }
 0x277   :  { %v709_v8 = vadd.f32 %v708_v6, %v561_v61  ;;  %2341 = vmatmul.mubr.msk.f32.vlgmr.msra.gmra.mrb[2].mxu1 %vm350_vm3, %v2886_v0  ;;  %2677 = vmatprep.subr.bf16.mxu0 %v2676_v2  ;;  %v987_v0 = vld [vmem:[%s3577_s1 + $0xf8] sm:$0xff]  ;;  %v2718_v3 = vpack.c.bf16 %v983_v63, %v980_v62 }
 0x278   :  { %352 = vadd.xlane.f32.xlu0 %v351_v7  ;;  %2679 = vmatpush3.bf16.xpose.msra.mxu0 %v2676_v2  ;;  %v2720_v6 = vpack.c.bf16 %v990_v1, %v987_v0  ;;  %v986_v7 = vld [vmem:[%s3577_s1 + $0xf0] sm:$0xff] }
 0x279   :  { %v2680_v9 = vpack.c.bf16 %v714_v5, %v709_v8  ;;  %2631 = vmatpush3.bf16.msra.mxu1 %v2628_v14  ;;  %v989_v8 = vld [vmem:[%s3577_s1 + $0x150] sm:$0xff]  ;;  %v988_v14 = vld [vmem:[%s3577_s1 + $0x100] sm:$0xff] }
 0x27a   :  { %2633 = vmatprep.subr.bf16.mxu1 %v2632_v16  ;;  %v2722_v12 = vpack.c.bf16 %v989_v8, %v986_v7 }
 0x27b   :  { %2681 = vmatprep.subr.bf16.mxu0 %v2680_v9 }
 0x27d   :  { %2635 = vmatpush3.bf16.msra.mxu1 %v2632_v16  ;;  %v2728_v16 = vpack.c.bf16 %v991_v15, %v988_v14  ;;  %v1429_v14 = vld [vmem:[%s3577_s1 + $0xb0] sm:$0xff] }
 0x27e   :  { %2637 = vmatprep.subr.bf16.mxu1 %v2636_v19 }
 0x27f   :  { %2394 = vmatmul.mubr.f32.vlgmr.msra.gmra.mrb[12].mxu0 %v638_v10  ;;  %v982_v10 = vld [vmem:[%s3577_s1 + $0x40] sm:$0xff] }
 0x280   :  { %2683 = vmatpush3.bf16.msra.mxu0 %v2680_v9  ;;  %v2724_v13 = vpack.c.bf16 %v985_v11, %v982_v10 }
 0x281   :  { %2639 = vmatpush3.bf16.msra.mxu1 %v2636_v19  ;;  %2717 = vmatprep.subr.bf16.mxu0 %v2716_v41  ;;  %v889_v19 = vld [vmem:[%s3578_s2 + $0x90] sm:$0xff]  ;;  %v2708_v41 = vpack.c.bf16 %v900_v37, %v899_v36  ;;  %v1430_v36 = vld [vmem:[%s3577_s1 + $0xb8] sm:$0xff] }
 0x282   :  { %2641 = vmatprep.subr.bf16.mxu1 %v2640_v22 }
 0x285   :  { %2643 = vmatpush3.bf16.msra.mxu1 %v2640_v22  ;;  %v2688_v22 = vpack.c.bf16 %v890_v21, %v889_v19 }
 0x286   :  { %2645 = vmatprep.subr.bf16.mxu1 %v2644_v25 }
 0x289   :  { %2647 = vmatpush3.bf16.msra.mxu1 %v2644_v25  ;;  %v2692_v25 = vpack.c.bf16 %v892_v24, %v891_v23  ;;  %v1428_v23 = vld [vmem:[%s3577_s1 + $0xa8] sm:$0xff]  ;;  %v1432_v24 = vld [vmem:[%s3577_s1 + $0x110] sm:$0xff] }
 0x28a   :  { %2649 = vmatprep.subr.bf16.mxu1 %v2648_v29 }
 0x28d   :  { %2651 = vmatpush3.bf16.msra.mxu1 %v2648_v29  ;;  %v2696_v29 = vpack.c.bf16 %v894_v28, %v893_v27 }
 0x28e   :  { %2653 = vmatprep.subr.bf16.mxu1 %v2652_v32 }
 0x291   :  { %2655 = vmatpush3.bf16.msra.mxu1 %v2652_v32  ;;  %v2700_v32 = vpack.c.bf16 %v896_v31, %v895_v30 }
 0x292   :  { %2657 = vmatprep.subr.bf16.mxu1 %v2656_v35 }
 0x295   :  { %2659 = vmatpush3.bf16.msra.mxu1 %v2656_v35  ;;  %v2704_v35 = vpack.c.bf16 %v898_v34, %v897_v33  ;;  %v1434_v33 = vld [vmem:[%s3577_s1 + $0x168] sm:$0xff] }
 0x296   :  { %2685 = vmatprep.subr.bf16.mxu1 %v2684_v20 }
 0x303   :  { %v356_v47 = vpop.xlane.xlu1 %355 }
 0x305   :  { %v353_v46 = vpop.xlane.xlu0 %352 }
 0x306   :  { %2889 = vrcp.f32 %v353_v46  ;;  %v901_v46 = vld [vmem:[%s3578_s2 + $0xf0] sm:$0xff] }
 0x307   :  { %2891 = vrcp.f32 %v356_v47  ;;  %v902_v47 = vld [vmem:[%s3578_s2 + $0xf8] sm:$0xff] }
 0x310   :  { %v2890_v39 = vpop.eup %2889 }
 0x311   :  { %v2892_v50 = vpop.eup %2891 }
 0x34a   :  { %v2342_v48 = vpop.f32.mrb[2].mxu1 }
 0x34b   :  { %v429_v49 = vpop.f32.mrb[3].mxu1  ;;  %v441_v52 = vmul.f32 %v2892_v50, %v2342_v48  ;;  %v2712_v48 = vpack.c.bf16 %v902_v47, %v901_v46  ;;  %v1433_v46 = vld [vmem:[%s3577_s1 + $0x118] sm:$0xff] }
 0x34c   :  { %v440_v51 = vmul.f32 %v2890_v39, %v429_v49  ;;  %v1436_v47 = vld [vmem:[%s3577_s1 + $0x178] sm:$0xff] }
 0x34e   :  { %2375 = vmatprep.mubr.f32.mxu1 %v440_v51 }
 0x34f   :  { %2376 = vmatmul.mubr.f32.vlgmr.msra.gmra.mrb[4].mxu1 %v441_v52 }
 0x350   :  { %2687 = vmatpush3.bf16.msra.mxu1 %v2684_v20 }
 0x351   :  { %2689 = vmatprep.subr.bf16.mxu1 %v2688_v22 }
 0x352   :  { %v2395_v53 = vpop.f32.mrb[12].mxu0 }
 0x353   :  { %v789_v54 = vadd.f32 %v2395_v53, %v3130_v38  ;;  %v783_v55 = vpop.f32.mrb[13].mxu0 }
 0x354   :  { %v784_v58 = vadd.f32 %v783_v55, %v3132_v40  ;;  %2691 = vmatpush3.bf16.msra.mxu1 %v2688_v22  ;;  %v2149_v55 = vld [vmem:[%s3577_s1 + $0x1b0] ss:$8 sm:$0x7]  ;;  %v1425_v22 = vld [vmem:[%s3577_s1 + $0x48] sm:$0xff] }
 0x355   :  { %v794_v60 = vmul.f32 1.442695, %v789_v54  ;;  %2693 = vmatprep.subr.bf16.mxu1 %v2692_v25  ;;  %v1002_v0 = vrot.slane %v2149_v55, %v3051_v45  ;;  %v2774_v28 = vpack.c.bf16 %v1428_v23, %v1425_v22 }
 0x356   :  { %v792_v61 = vmul.f32 1.442695, %v784_v58 }
 0x357   :  { %2893 = vpow2.f32 %v794_v60  ;;  %v998_v60 = vrot.slane %v2149_v55, %v3043_v43 }
 0x358   :  { %2895 = vpow2.f32 %v792_v61  ;;  %2695 = vmatpush3.bf16.msra.mxu1 %v2692_v25  ;;  %v1435_v25 = vld [vmem:[%s3577_s1 + $0x170] sm:$0xff] }
 0x359   :  { %2697 = vmatprep.subr.bf16.mxu1 %v2696_v29  ;;  %v2776_v31 = vpack.c.bf16 %v1435_v25, %v1432_v24 }
 0x35c   :  { %2699 = vmatpush3.bf16.msra.mxu1 %v2696_v29 }
 0x35d   :  { %2701 = vmatprep.subr.bf16.mxu1 %v2700_v32 }
 0x360   :  { %2703 = vmatpush3.bf16.msra.mxu1 %v2700_v32  ;;  %v1431_v32 = vld [vmem:[%s3577_s1 + $0x108] sm:$0xff] }
 0x361   :  { %v2894_v2 = vpop.eup %2893  ;;  %2705 = vmatprep.subr.bf16.mxu1 %v2704_v35  ;;  %v2778_v37 = vpack.c.bf16 %v1434_v33, %v1431_v32 }
 0x362   :  { %v2896_v4 = vpop.eup %2895  ;;  %v799_v5 = vsel %vm350_vm3, %v2894_v2, 0.0 }
 0x363   :  { %800 = vadd.xlane.f32.xlu1 %v799_v5  ;;  %2400 = vmatprep.mubr.msk.f32.mxu0 %vm350_vm3, %v2896_v4  ;;  %v796_v9 = vsel %vm350_vm3, %v2896_v4, 0.0 }
 0x364   :  { %2401 = vmatmul.mubr.msk.f32.vlgmr.msra.gmra.mrb[14].mxu0 %vm350_vm3, %v2894_v2  ;;  %797 = vadd.xlane.f32.xlu0 %v796_v9 }
 0x365   :  { %2719 = vmatpush1.bf16.msra.mxu0 %v2718_v3  ;;  %1074 = vmatprep.mubr.f32.mxu0 %v2952_v26  ;;  %v1006_v3 = vrot.slane %v2149_v55, %v3076_v59  ;;  %v1338_v55 = vld [vmem:[%s3578_s2 + $0x130] sm:$0xff] }
 0x366   :  { %2721 = vmatprep.subr.bf16.mxu0 %v2720_v6  ;;  %2707 = vmatpush3.bf16.msra.mxu1 %v2704_v35  ;;  %v1427_v35 = vld [vmem:[%s3577_s1 + $0x58] sm:$0xff] }
 0x367   :  { %2709 = vmatprep.subr.bf16.mxu1 %v2708_v41 }
 0x369   :  { %2723 = vmatpush1.bf16.msra.mxu0 %v2722_v12 }
 0x36a   :  { %2725 = vmatprep.subr.bf16.mxu0 %v2724_v13  ;;  %2711 = vmatpush3.bf16.msra.mxu1 %v2708_v41  ;;  %v2780_v41 = vpack.c.bf16 %v1430_v36, %v1427_v35 }
 0x36b   :  { %2713 = vmatprep.subr.bf16.mxu1 %v2712_v48 }
 0x36c   :  { %2150 = vmatmul.mubr.msk.f32.vlgmr.msra.gmra.mrb[16].mxu0 %vm33_vm0, %v3061_v57 }
 0x36d   :  { %2727 = vmatpush3.bf16.msra.mxu0 %v2724_v13  ;;  %1080 = vmatprep.mubr.f32.mxu0 %v2952_v26  ;;  %v1426_v13 = vld [vmem:[%s3577_s1 + $0x50] sm:$0xff] }
 0x36e   :  { %2729 = vmatprep.subr.bf16.mxu0 %v2728_v16  ;;  %2715 = vmatpush3.bf16.msra.mxu1 %v2712_v48  ;;  %v2772_v15 = vpack.c.bf16 %v1429_v14, %v1426_v13  ;;  %v2784_v48 = vpack.c.bf16 %v1436_v47, %v1433_v46 }
 0x370   :  { %2151 = vmatmul.mubr.msk.f32.gmra.mrb[18].mxu0 %vm33_vm0, %v3059_v56 }
 0x371   :  { %2731 = vmatpush3.bf16.msra.mxu0 %v2728_v16  ;;  %2446 = vmatprep.mubr.msk.f32.mxu0 %vm33_vm0, %v3061_v57 }
 0x374   :  { %2447 = vmatmul.mubr.msk.f32.vlgmr.msra.gmra.mrb[20].mxu0 %vm33_vm0, %v3059_v56 }
 0x3f0   :  { %v801_v49 = vpop.xlane.xlu1 %800 }
 0x3f1   :  { %v798_v39 = vpop.xlane.xlu0 %797 }
 0x3f2   :  { %2897 = vrcp.f32 %v798_v39  ;;  %v1332_v39 = vld [vmem:[%s3578_s2 + $0x100] sm:$0xff] }
 0x3f3   :  { %2899 = vrcp.f32 %v801_v49  ;;  %v1333_v49 = vld [vmem:[%s3578_s2 + $0x108] sm:$0xff] }
 0x3fc   :  { %v2898_v51 = vpop.eup %2897 }
 0x3fd   :  { %v2900_v53 = vpop.eup %2899 }
 0x437   :  { %v2402_v50 = vpop.f32.mrb[14].mxu0 }
 0x438   :  { %v874_v52 = vpop.f32.mrb[15].mxu0  ;;  %v886_v58 = vmul.f32 %v2900_v53, %v2402_v50  ;;  %v2740_v50 = vpack.c.bf16 %v1333_v49, %v1332_v39  ;;  %v1337_v53 = vld [vmem:[%s3578_s2 + $0x128] sm:$0xff]  ;;  %v1779_v49 = vld [vmem:[%s3578_s2 + $0x190] sm:$0xff] }
 0x439   :  { %v885_v54 = vmul.f32 %v2898_v51, %v874_v52  ;;  %v1335_v51 = vld [vmem:[%s3578_s2 + $0x118] sm:$0xff]  ;;  %v1336_v52 = vld [vmem:[%s3578_s2 + $0x120] sm:$0xff] }
 0x43a   :  { %2741 = vmatprep.subr.bf16.mxu1 %v2740_v50 }
 0x43b   :  { %2435 = vmatprep.mubr.f32.mxu1 %v885_v54  ;;  %v2748_v54 = vpack.c.bf16 %v1337_v53, %v1336_v52  ;;  %v1782_v52 = vld [vmem:[%s3578_s2 + $0x1a8] sm:$0xff] }
 0x43c   :  { %2436 = vmatmul.mubr.f32.vlgmr.msra.gmra.mrb[4].mxu1 %v886_v58 }
 0x43d   :  { %2743 = vmatpush3.bf16.msra.mxu1 %v2740_v50  ;;  %v1780_v50 = vld [vmem:[%s3578_s2 + $0x198] sm:$0xff] }
 0x43f   :  { %v1076_v61 = vpop.f32.mrb[16].mxu0 }
 0x440   :  { %v1077_v62 = vadd.f32 %v1076_v61, %v998_v60  ;;  %v1078_v63 = vpop.f32.mrb[17].mxu0  ;;  %v1341_v61 = vld [vmem:[%s3578_s2 + $0x148] sm:$0xff] }
 0x441   :  { %v1079_v4 = vadd.f32 %v1078_v63, %v1002_v0  ;;  %v1342_v63 = vld [vmem:[%s3578_s2 + $0x150] sm:$0xff] }
 0x442   :  { %2453 = vmatprep.mubr.f32.mxu0 %v1077_v62 }
 0x443   :  { %v1082_v1 = vpop.f32.mrb[18].mxu0 }
 0x444   :  { %v1084_v2 = vpop.f32.mrb[19].mxu0  ;;  %v1083_v12 = vadd.f32 %v1082_v1, %v998_v60  ;;  %v1340_v60 = vld [vmem:[%s3578_s2 + $0x140] sm:$0xff] }
 0x445   :  { %v1085_v5 = vadd.f32 %v1084_v2, %v1002_v0  ;;  %v2756_v62 = vpack.c.bf16 %v1341_v61, %v1340_v60  ;;  %v1343_v0 = vld [vmem:[%s3578_s2 + $0x158] sm:$0xff]  ;;  %v1344_v2 = vld [vmem:[%s3578_s2 + $0x160] sm:$0xff]  ;;  %v1786_v60 = vld [vmem:[%s3578_s2 + $0x1c8] sm:$0xff] }
 0x446   :  { %v2760_v1 = vpack.c.bf16 %v1343_v0, %v1342_v63  ;;  %v1788_v63 = vld [vmem:[%s3578_s2 + $0x1d8] sm:$0xff] }
 0x447   :  { %v2732_v6 = vpack.c.bf16 %v1085_v5, %v1079_v4  ;;  %v2448_v7 = vpop.f32.mrb[20].mxu0  ;;  %v1346_v5 = vld [vmem:[%s3578_s2 + $0x170] sm:$0xff] }
 0x448   :  { %v1159_v8 = vadd.f32 %v2448_v7, %v1006_v3  ;;  %v1153_v9 = vpop.f32.mrb[21].mxu0 }
 0x449   :  { %v1154_v10 = vadd.f32 %v1153_v9, %v1006_v3  ;;  %2733 = vmatprep.subr.bf16.mxu0 %v2732_v6  ;;  %v1345_v3 = vld [vmem:[%s3578_s2 + $0x168] sm:$0xff] }
 0x44a   :  { %2735 = vmatpush3.bf16.xpose.msra.mxu0 %v2732_v6  ;;  %v2764_v4 = vpack.c.bf16 %v1345_v3, %v1344_v2  ;;  %v1347_v6 = vld [vmem:[%s3578_s2 + $0x178] sm:$0xff]  ;;  %v1790_v2 = vld [vmem:[%s3578_s2 + $0x1e8] sm:$0xff] }
 0x44b   :  { %v2736_v11 = vpack.c.bf16 %v1159_v8, %v1154_v10  ;;  %v2768_v7 = vpack.c.bf16 %v1347_v6, %v1346_v5  ;;  %v1792_v5 = vld [vmem:[%s3578_s2 + $0x1f8] sm:$0xff] }
 0x44d   :  { %2737 = vmatprep.subr.bf16.mxu0 %v2736_v11 }
 0x451   :  { %2454 = vmatmul.mubr.f32.vlgmr.msra.gmra.mrb[22].mxu0 %v1083_v12 }
 0x452   :  { %2739 = vmatpush3.bf16.msra.mxu0 %v2736_v11 }
 0x453   :  { %2773 = vmatprep.subr.bf16.mxu0 %v2772_v15  ;;  %v2156_v15 = vld [vmem:[%s3577_s1 + $0x1c8] ss:$8 sm:$0x7] }
 0x454   :  { %v1451_v24 = vrot.slane %v2156_v15, %v3076_v59 }
 0x524   :  { %v2455_v16 = vpop.f32.mrb[22].mxu0 }
 0x525   :  { %v1234_v17 = vadd.f32 %v2455_v16, %v3130_v38  ;;  %v1228_v18 = vpop.f32.mrb[23].mxu0 }
 0x526   :  { %v1229_v19 = vadd.f32 %v1228_v18, %v3132_v40 }
 0x527   :  { %v1239_v20 = vmul.f32 1.442695, %v1234_v17  ;;  %v1443_v17 = vrot.slane %v2156_v15, %v3043_v43 }
 0x528   :  { %v1237_v21 = vmul.f32 1.442695, %v1229_v19 }
 0x529   :  { %2901 = vpow2.f32 %v1239_v20 }
 0x52a   :  { %2903 = vpow2.f32 %v1237_v21  ;;  %v1447_v21 = vrot.slane %v2156_v15, %v3051_v45  ;;  %v79_v15 = vsub.s32 4, %v3040_v42 }
 0x533   :  { %v2902_v27 = vpop.eup %2901 }
 0x534   :  { %v2904_v29 = vpop.eup %2903  ;;  %v1244_v30 = vsel %vm350_vm3, %v2902_v27, 0.0 }
 0x535   :  { %1245 = vadd.xlane.f32.xlu1 %v1244_v30  ;;  %2460 = vmatprep.mubr.msk.f32.mxu0 %vm350_vm3, %v2904_v29  ;;  %v1241_v34 = vsel %vm350_vm3, %v2904_v29, 0.0 }
 0x536   :  { %2461 = vmatmul.mubr.msk.f32.vlgmr.msra.gmra.mrb[24].mxu0 %vm350_vm3, %v2902_v27  ;;  %1242 = vadd.xlane.f32.xlu0 %v1241_v34 }
 0x537   :  { %2775 = vmatpush1.bf16.msra.mxu0 %v2774_v28  ;;  %1519 = vmatprep.mubr.f32.mxu0 %v2952_v26 }
 0x538   :  { %2777 = vmatprep.subr.bf16.mxu0 %v2776_v31 }
 0x53b   :  { %2779 = vmatpush1.bf16.msra.mxu0 %v2778_v37 }
 0x53c   :  { %2781 = vmatprep.subr.bf16.mxu0 %v2780_v41 }
 0x53e   :  { %2157 = vmatmul.mubr.msk.f32.vlgmr.msra.gmra.mrb[26].mxu0 %vm33_vm0, %v3061_v57 }
 0x53f   :  { %2783 = vmatpush3.bf16.msra.mxu0 %v2780_v41  ;;  %1525 = vmatprep.mubr.f32.mxu0 %v2952_v26  ;;  %v1334_v26 = vld [vmem:[%s3578_s2 + $0x110] sm:$0xff] }
 0x540   :  { %2785 = vmatprep.subr.bf16.mxu0 %v2784_v48 }
 0x542   :  { %2158 = vmatmul.mubr.msk.f32.gmra.mrb[28].mxu0 %vm33_vm0, %v3059_v56 }
 0x543   :  { %2787 = vmatpush3.bf16.msra.mxu0 %v2784_v48  ;;  %2506 = vmatprep.mubr.msk.f32.mxu0 %vm33_vm0, %v3061_v57  ;;  %v2744_v57 = vpack.c.bf16 %v1335_v51, %v1334_v26  ;;  %v2800_v51 = vpack.c.bf16 %v1780_v50, %v1779_v49 }
 0x545   :  { %2745 = vmatprep.subr.bf16.mxu1 %v2744_v57 }
 0x546   :  { %2507 = vmatmul.mubr.msk.f32.vlgmr.msra.gmra.mrb[30].mxu0 %vm33_vm0, %v3059_v56  ;;  %v1339_v56 = vld [vmem:[%s3578_s2 + $0x138] sm:$0xff]  ;;  %2747 = vmatpush3.bf16.msra.mxu1 %v2744_v57  ;;  %v1781_v57 = vld [vmem:[%s3578_s2 + $0x1a0] sm:$0xff] }
 0x547   :  { %2749 = vmatprep.subr.bf16.mxu1 %v2748_v54  ;;  %v2752_v58 = vpack.c.bf16 %v1339_v56, %v1338_v55  ;;  %v2804_v53 = vpack.c.bf16 %v1782_v52, %v1781_v57  ;;  %v1784_v55 = vld [vmem:[%s3578_s2 + $0x1b8] sm:$0xff] }
 0x54a   :  { %2751 = vmatpush3.bf16.msra.mxu1 %v2748_v54  ;;  %v1783_v54 = vld [vmem:[%s3578_s2 + $0x1b0] sm:$0xff] }
 0x54b   :  { %2753 = vmatprep.subr.bf16.mxu1 %v2752_v58  ;;  %v2808_v56 = vpack.c.bf16 %v1784_v55, %v1783_v54  ;;  %v1908_v54 = vsub.s32 3, %v3040_v42 }
 0x54e   :  { %2755 = vmatpush3.bf16.msra.mxu1 %v2752_v58  ;;  %v1785_v58 = vld [vmem:[%s3578_s2 + $0x1c0] sm:$0xff] }
 0x54f   :  { %2757 = vmatprep.subr.bf16.mxu1 %v2756_v62  ;;  %v2812_v61 = vpack.c.bf16 %v1786_v60, %v1785_v58 }
 0x552   :  { %2759 = vmatpush3.bf16.msra.mxu1 %v2756_v62  ;;  %v1787_v62 = vld [vmem:[%s3578_s2 + $0x1d0] sm:$0xff] }
 0x553   :  { %2761 = vmatprep.subr.bf16.mxu1 %v2760_v1  ;;  %v2816_v0 = vpack.c.bf16 %v1788_v63, %v1787_v62 }
 0x556   :  { %2763 = vmatpush3.bf16.msra.mxu1 %v2760_v1  ;;  %v1789_v1 = vld [vmem:[%s3578_s2 + $0x1e0] sm:$0xff] }
 0x557   :  { %2765 = vmatprep.subr.bf16.mxu1 %v2764_v4  ;;  %v2820_v3 = vpack.c.bf16 %v1790_v2, %v1789_v1 }
 0x55a   :  { %2767 = vmatpush3.bf16.msra.mxu1 %v2764_v4  ;;  %v1791_v4 = vld [vmem:[%s3578_s2 + $0x1f0] sm:$0xff] }
 0x55b   :  { %2769 = vmatprep.subr.bf16.mxu1 %v2768_v7  ;;  %v2824_v6 = vpack.c.bf16 %v1792_v5, %v1791_v4 }
 0x55e   :  { %2771 = vmatpush3.bf16.msra.mxu1 %v2768_v7 }
 0x5c2   :  { %v1246_v9 = vpop.xlane.xlu1 %1245 }
 0x5c3   :  { %v1243_v8 = vpop.xlane.xlu0 %1242 }
 0x5c4   :  { %2905 = vrcp.f32 %v1243_v8 }
 0x5c5   :  { %2907 = vrcp.f32 %v1246_v9 }
 0x5ce   :  { %v2906_v11 = vpop.eup %2905 }
 0x5cf   :  { %v2908_v13 = vpop.eup %2907 }
 0x609   :  { %v2462_v10 = vpop.f32.mrb[24].mxu0 }
 0x60a   :  { %v1319_v12 = vpop.f32.mrb[25].mxu0  ;;  %v1331_v16 = vmul.f32 %v2908_v13, %v2462_v10 }
 0x60b   :  { %v1330_v14 = vmul.f32 %v2906_v11, %v1319_v12 }
 0x60d   :  { %2495 = vmatprep.mubr.f32.mxu1 %v1330_v14 }
 0x60e   :  { %2496 = vmatmul.mubr.f32.vlgmr.msra.gmra.mrb[4].mxu1 %v1331_v16  ;;  %v80_v16 = vrot.slane %v3048_v44, %v79_v15  ;;  %v2029_v15 = vld [vmem:[%s3578_s2 + $0x248] sm:$0xff] }
 0x611   :  { %v1521_v18 = vpop.f32.mrb[26].mxu0 }
 0x612   :  { %v1522_v19 = vadd.f32 %v1521_v18, %v1443_v17  ;;  %v1523_v20 = vpop.f32.mrb[27].mxu0 }
 0x613   :  { %v1524_v25 = vadd.f32 %v1523_v20, %v1447_v21 }
 0x614   :  { %2513 = vmatprep.mubr.f32.mxu0 %v1522_v19  ;;  %v2926_v19 = vld [vmem:[%s3576_s0] sm:$0xff] }
 0x615   :  { %v1527_v22 = vpop.f32.mrb[28].mxu0  ;;  %v81_v20 = vadd.f32 %v2926_v19, %v80_v16 }
 0x616   :  { %v1529_v23 = vpop.f32.mrb[29].mxu0  ;;  %v1528_v33 = vadd.f32 %v1527_v22, %v1443_v17  ;;  %v2925_v17 = vld [vmem:[%s3576_s0 + $0x8] sm:$0xff] }
 0x617   :  { %v1530_v27 = vadd.f32 %v1529_v23, %v1447_v21  ;;  %v82_v18 = vadd.f32 %v2925_v17, %v80_v16  ;;  %v2030_v16 = vld [vmem:[%s3578_s2 + $0x250] sm:$0xff] }
 0x619   :  { %v2788_v28 = vpack.c.bf16 %v1530_v27, %v1524_v25  ;;  %v2508_v29 = vpop.f32.mrb[30].mxu0 }
 0x61a   :  { %v1604_v30 = vadd.f32 %v2508_v29, %v1451_v24  ;;  %v1598_v31 = vpop.f32.mrb[31].mxu0 }
 0x61b   :  { %v1599_v32 = vadd.f32 %v1598_v31, %v1451_v24  ;;  %2789 = vmatprep.subr.bf16.mxu0 %v2788_v28  ;;  %v1912_v31 = vld [vmem:[%s3579_s3] sm:$0xff] }
 0x61c   :  { %2791 = vmatpush3.bf16.xpose.msra.mxu0 %v2788_v28 }
 0x61d   :  { %v2792_v43 = vpack.c.bf16 %v1604_v30, %v1599_v32  ;;  %v1913_v32 = vld [vmem:[%s3579_s3 + $0x8] sm:$0xff] }
 0x61f   :  { %2793 = vmatprep.subr.bf16.mxu0 %v2792_v43 }
 0x623   :  { %2514 = vmatmul.mubr.f32.vlgmr.msra.gmra.mrb[32].mxu0 %v1528_v33  ;;  %v1914_v33 = vld [vmem:[%s3579_s3 + $0x10] sm:$0xff] }
 0x624   :  { %2795 = vmatpush3.bf16.msra.mxu0 %v2792_v43  ;;  %v2828_v43 = vpack.c.bf16 %v1913_v32, %v1912_v31 }
 0x626   :  { %2829 = vmatprep.subr.bf16.mxu0 %v2828_v43 }
 0x6f6   :  { %v2515_v45 = vpop.f32.mrb[32].mxu0 }
 0x6f7   :  { %v1679_v34 = vadd.f32 %v2515_v45, %v3130_v38  ;;  %v1673_v35 = vpop.f32.mrb[33].mxu0  ;;  %v1777_v38 = vld [vmem:[%s3578_s2 + $0x180] sm:$0xff]  ;;  %v1915_v45 = vld [vmem:[%s3579_s3 + $0x18] sm:$0xff] }
 0x6f8   :  { %v1674_v36 = vadd.f32 %v1673_v35, %v3132_v40  ;;  %v1778_v40 = vld [vmem:[%s3578_s2 + $0x188] sm:$0xff]  ;;  %v2020_v35 = vld [vmem:[%s3578_s2 + $0x200] sm:$0xff] }
 0x6f9   :  { %v1684_v37 = vmul.f32 1.442695, %v1679_v34  ;;  %v2796_v26 = vpack.c.bf16 %v1778_v40, %v1777_v38  ;;  %v2832_v34 = vpack.c.bf16 %v1915_v45, %v1914_v33 }
 0x6fa   :  { %v1682_v41 = vmul.f32 1.442695, %v1674_v36  ;;  %v2021_v36 = vld [vmem:[%s3578_s2 + $0x208] sm:$0xff] }
 0x6fb   :  { %2909 = vpow2.f32 %v1684_v37  ;;  %2797 = vmatprep.subr.bf16.mxu1 %v2796_v26  ;;  %v2836_v37 = vpack.c.bf16 %v2021_v36, %v2020_v35 }
 0x6fc   :  { %2911 = vpow2.f32 %v1682_v41  ;;  %2799 = vmatpush3.bf16.msra.mxu1 %v2796_v26 }
 0x6fd   :  { %2801 = vmatprep.subr.bf16.mxu1 %v2800_v51 }
 0x700   :  { %2803 = vmatpush3.bf16.msra.mxu1 %v2800_v51 }
 0x701   :  { %2805 = vmatprep.subr.bf16.mxu1 %v2804_v53 }
 0x704   :  { %2807 = vmatpush3.bf16.msra.mxu1 %v2804_v53 }
 0x705   :  { %v2910_v46 = vpop.eup %2909  ;;  %2809 = vmatprep.subr.bf16.mxu1 %v2808_v56 }
 0x706   :  { %v2912_v47 = vpop.eup %2911  ;;  %v1689_v48 = vsel %vm350_vm3, %v2910_v46, 0.0 }
 0x707   :  { %1690 = vadd.xlane.f32.xlu1 %v1689_v48  ;;  %2520 = vmatprep.mubr.msk.f32.mxu0 %vm350_vm3, %v2912_v47  ;;  %v1686_v39 = vsel %vm350_vm3, %v2912_v47, 0.0 }
 0x708   :  { %2521 = vmatmul.mubr.msk.f32.vlgmr.msra.gmra.mrb[34].mxu0 %vm350_vm3, %v2910_v46  ;;  %1687 = vadd.xlane.f32.xlu0 %v1686_v39 }
 0x709   :  { %2811 = vmatpush3.bf16.msra.mxu1 %v2808_v56  ;;  %2831 = vmatpush3.bf16.msra.mxu0 %v2828_v43  ;;  %v3505_v56 = vld [vmem:[%s3578_s2 + $0x280] sm:$0xff] }
 0x70a   :  { %2813 = vmatprep.subr.bf16.mxu1 %v2812_v61  ;;  %2833 = vmatprep.subr.bf16.mxu0 %v2832_v34  ;;  %v1903_v58 = vrot.slane %v3505_v56, %v3076_v59  ;;  %v1909_v1 = vrot.slane %v3505_v56, %v1908_v54  ;;  %v2022_v59 = vld [vmem:[%s3578_s2 + $0x210] sm:$0xff] }
 0x70d   :  { %2815 = vmatpush3.bf16.msra.mxu1 %v2812_v61  ;;  %2835 = vmatpush3.bf16.msra.mxu0 %v2832_v34 }
 0x70e   :  { %2817 = vmatprep.subr.bf16.mxu1 %v2816_v0  ;;  %2837 = vmatprep.subr.bf16.mxu0 %v2836_v37 }
 0x711   :  { %2819 = vmatpush3.bf16.msra.mxu1 %v2816_v0 }
 0x712   :  { %2821 = vmatprep.subr.bf16.mxu1 %v2820_v3 }
 0x715   :  { %2823 = vmatpush3.bf16.msra.mxu1 %v2820_v3 }
 0x716   :  { %2825 = vmatprep.subr.bf16.mxu1 %v2824_v6 }
 0x719   :  { %2827 = vmatpush3.bf16.msra.mxu1 %v2824_v6  ;;  %v2023_v6 = vld [vmem:[%s3578_s2 + $0x218] sm:$0xff] }
 0x794   :  { %v1691_v8 = vpop.xlane.xlu1 %1690 }
 0x795   :  { %v1688_v7 = vpop.xlane.xlu0 %1687 }
 0x796   :  { %2913 = vrcp.f32 %v1688_v7  ;;  %v2840_v7 = vpack.c.bf16 %v2023_v6, %v2022_v59 }
 0x797   :  { %2915 = vrcp.f32 %v1691_v8  ;;  %v2024_v8 = vld [vmem:[%s3578_s2 + $0x220] sm:$0xff] }
 0x7a0   :  { %v2914_v10 = vpop.eup %2913 }
 0x7a1   :  { %v2916_v12 = vpop.eup %2915 }
 0x7db   :  { %v2522_v9 = vpop.f32.mrb[34].mxu0 }
 0x7dc   :  { %v1764_v11 = vpop.f32.mrb[35].mxu0  ;;  %v1776_v14 = vmul.f32 %v2916_v12, %v2522_v9  ;;  %v2025_v9 = vld [vmem:[%s3578_s2 + $0x228] sm:$0xff]  ;;  %v2027_v12 = vld [vmem:[%s3578_s2 + $0x238] sm:$0xff] }
 0x7dd   :  { %v1775_v13 = vmul.f32 %v2914_v10, %v1764_v11  ;;  %v2844_v10 = vpack.c.bf16 %v2025_v9, %v2024_v8  ;;  %v2026_v11 = vld [vmem:[%s3578_s2 + $0x230] sm:$0xff] }
 0x7df   :  { %2555 = vmatprep.mubr.f32.mxu1 %v1775_v13  ;;  %v2848_v13 = vpack.c.bf16 %v2027_v12, %v2026_v11 }
 0x7e0   :  { %2556 = vmatmul.mubr.f32.vlgmr.msra.gmra.mrb[4].mxu1 %v1776_v14  ;;  %v2028_v14 = vld [vmem:[%s3578_s2 + $0x240] sm:$0xff] }
 0x7e1   :  { %v2852_v17 = vpack.c.bf16 %v2029_v15, %v2028_v14 }
 0x8b3   :  { %v2557_v21 = vpop.f32.mrb[4].mxu1 }
 0x8b4   :  { %v3468_v22 = vadd.f32 %v2557_v21, %v82_v18  ;;  %v1859_v23 = vpop.f32.mrb[5].mxu1  ;;  %v2031_v18 = vld [vmem:[%s3578_s2 + $0x258] sm:$0xff]  ;;  %v2033_v21 = vld [vmem:[%s3578_s2 + $0x268] sm:$0xff] }
 0x8b5   :  { %v3470_v24 = vadd.f32 %v1859_v23, %v81_v20  ;;  %v2856_v19 = vpack.c.bf16 %v2031_v18, %v2030_v16  ;;  %v2032_v20 = vld [vmem:[%s3578_s2 + $0x260] sm:$0xff] }
 0x8b6   :  { %v1873_v25 = vsel %vm33_vm0, %v3468_v22, 0.0  ;;  %v1879_v44 = vmul.f32 %v3468_v22, %v3468_v22  ;;  %v2860_v23 = vpack.c.bf16 %v2033_v21, %v2032_v20 }
 0x8b7   :  { %1874 = vadd.xlane.f32.xlu1 %v1873_v25  ;;  %v1870_v27 = vsel %vm33_vm0, %v3470_v24, 0.0  ;;  %v1878_v28 = vmul.f32 %v3470_v24, %v3470_v24  ;;  %v2034_v25 = vld [vmem:[%s3578_s2 + $0x270] sm:$0xff] }
 0x8b8   :  { %1871 = vadd.xlane.f32.xlu0 %v1870_v27  ;;  %v1883_v29 = vsel %vm33_vm0, %v1879_v44, 0.0  ;;  %v2035_v44 = vld [vmem:[%s3578_s2 + $0x278] sm:$0xff]  ;;  %s2954_s2 = smov [#allocation2]  }
 0x8b9   :  { %v1880_v30 = vsel %vm33_vm0, %v1878_v28, 0.0  ;;  %v2864_v27 = vpack.c.bf16 %v2035_v44, %v2034_v25  ;;  %v2163_v28 = vld [vmem:[%s3579_s3 + $0x20] ss:$0 sm:$0xff]  ;;  %s2124_s3 = sshll.u32 %s2954_s2, 4  ;;  %s2125_s3 = int_to_ptr.vmem [resolvable:$true] %s2124_s3 }
 0x8ba   :  { %s2928_s10 = scalar_lea.vmem %s2125_s3, 256  ;;  %p2933_p1 = scmp.lt.s32.totalorder %s2125_s3, %s2125_s3 }
 0x8bb   :  { %1884 = vadd.xlane.f32.xlu1 %v1883_v29  ;;  %p2929_p0 = scmp.ne.s32.totalorder %s2125_s3, %s2928_s10  ;;  %p2934_p2 = scmp.lt.s32.totalorder %s2928_s10, %s2928_s10 }
 0x8bc   :  { %1881 = vadd.xlane.f32.xlu0 %v1880_v30 }
 0x8bd   :  { %p2935_p3 = por %p2934_p2, %p2933_p1 }
 0x8bf   :  { %p2936_p4 = pnand %p2935_p3, %p2929_p0 }
 0x944   :  { %v1875_v41 = vpop.xlane.xlu1 %1874 }
 0x945   :  { %v1877_v46 = vmul.f32 0.03125, %v1875_v41  ;;  %v1872_v47 = vpop.xlane.xlu0 %1871 }
 0x946   :  { %v1876_v48 = vmul.f32 0.03125, %v1872_v47 }
 0x947   :  { %v1889_v38 = vmul.f32 %v1877_v46, %v1877_v46  ;;  %v1893_v55 = vsub.f32 %v3468_v22, %v1877_v46 }
 0x948   :  { %v1885_v39 = vpop.xlane.xlu1 %1884  ;;  %v1888_v26 = vmul.f32 %v1876_v48, %v1876_v48  ;;  %v1892_v61 = vsub.f32 %v3470_v24, %v1876_v48 }
 0x949   :  { %v1887_v40 = vmul.f32 0.03125, %v1885_v39  ;;  %v1882_v49 = vpop.xlane.xlu0 %1881 }
 0x94a   :  { %v1886_v50 = vmul.f32 0.03125, %v1882_v49 }
 0x94b   :  { %v1891_v51 = vsub.f32 %v1887_v40, %v1889_v38 }
 0x94c   :  { %v1890_v57 = vsub.f32 %v1886_v50, %v1888_v26 }
 0x94d   :  { %v1895_v52 = vadd.f32 1e-05, %v1891_v51 }
 0x94e   :  { %v1894_v53 = vadd.f32 1e-05, %v1890_v57  ;;  %v2038_v57 = vsub.s32 5, %v3040_v42 }
 0x94f   :  { %2917 = vrsqrt.f32 %v1895_v52 }
 0x950   :  { %2919 = vrsqrt.f32 %v1894_v53  ;;  %v2039_v52 = vrot.slane %v3505_v56, %v2038_v57 }
 0x959   :  { %v2918_v60 = vpop.eup %2917 }
 0x95a   :  { %v2920_v62 = vpop.eup %2919  ;;  %v1899_v63 = vmul.f32 %v2918_v60, %v1893_v55 }
 0x95b   :  { %v1898_v0 = vmul.f32 %v2920_v62, %v1892_v61 }
 0x95c   :  { %v1905_v2 = vmul.f32 %v1903_v58, %v1899_v63 }
 0x95d   :  { %v1904_v3 = vmul.f32 %v1903_v58, %v1898_v0 }
 0x95e   :  { %v1911_v5 = vadd.f32 %v1909_v1, %v1905_v2 }
 0x95f   :  { %v1910_v4 = vadd.f32 %v1909_v1, %v1904_v3 }
 0x961   :  { %2566 = vmatprep.mubr.msk.f32.mxu0 %vm33_vm0, %v1910_v4 }
 0x962   :  { %2567 = vmatmul.mubr.msk.f32.vlgmr.msra.gmra.mrb[36].mxu0 %vm33_vm0, %v1911_v5 }
 0x963   :  { %2839 = vmatpush3.bf16.msra.mxu0 %v2836_v37 }
 0x964   :  { %2841 = vmatprep.subr.bf16.mxu0 %v2840_v7 }
 0x967   :  { %2843 = vmatpush3.bf16.msra.mxu0 %v2840_v7 }
 0x968   :  { %2845 = vmatprep.subr.bf16.mxu0 %v2844_v10 }
 0x96b   :  { %2847 = vmatpush3.bf16.msra.mxu0 %v2844_v10 }
 0x96c   :  { %2849 = vmatprep.subr.bf16.mxu0 %v2848_v13 }
 0x96f   :  { %2851 = vmatpush3.bf16.msra.mxu0 %v2848_v13 }
 0x970   :  { %2853 = vmatprep.subr.bf16.mxu0 %v2852_v17 }
 0x973   :  { %2855 = vmatpush3.bf16.msra.mxu0 %v2852_v17 }
 0x974   :  { %2857 = vmatprep.subr.bf16.mxu0 %v2856_v19 }
 0x977   :  { %2859 = vmatpush3.bf16.msra.mxu0 %v2856_v19 }
 0x978   :  { %2861 = vmatprep.subr.bf16.mxu0 %v2860_v23 }
 0x97b   :  { %2863 = vmatpush3.bf16.msra.mxu0 %v2860_v23 }
 0x97c   :  { %2865 = vmatprep.subr.bf16.mxu0 %v2864_v27 }
 0x97f   :  { %2867 = vmatpush3.bf16.msra.mxu0 %v2864_v27 }
 0xa35   :  { %v2568_v29 = vpop.f32.mrb[36].mxu0 }
 0xa36   :  { %v1999_v30 = vadd.f32 %v2568_v29, %v2163_v28  ;;  %v1993_v31 = vpop.f32.mrb[37].mxu0 }
 0xa37   :  { %v1994_v32 = vadd.f32 %v2163_v28, %v1993_v31 }
 0xa38   :  { %v2005_v43 = vmul.f32 0.044715, %v1999_v30  ;;  %v2003_v26 = vmul.f32 0.5, %v1999_v30 }
 0xa39   :  { %v2004_v33 = vmul.f32 0.044715, %v1994_v32  ;;  %v2002_v40 = vmul.f32 0.5, %v1994_v32 }
 0xa3a   :  { %v2007_v45 = vmul.f32 %v2005_v43, %v1999_v30 }
 0xa3b   :  { %v2006_v34 = vmul.f32 %v2004_v33, %v1994_v32 }
 0xa3c   :  { %v2009_v35 = vmul.f32 %v2007_v45, %v1999_v30 }
 0xa3d   :  { %v2008_v36 = vmul.f32 %v2006_v34, %v1994_v32 }
 0xa3e   :  { %v2011_v37 = vadd.f32 %v2009_v35, %v1999_v30 }
 0xa3f   :  { %v2010_v41 = vadd.f32 %v2008_v36, %v1994_v32 }
 0xa40   :  { %v2013_v46 = vmul.f32 0.7978846, %v2011_v37 }
 0xa41   :  { %v2012_v47 = vmul.f32 0.7978846, %v2010_v41 }
 0xa42   :  { %2921 = vtanh.f32 %v2013_v46 }
 0xa43   :  { %2923 = vtanh.f32 %v2012_v47 }
 0xa4c   :  { %v2922_v48 = vpop.eup %2921 }
 0xa4d   :  { %v2924_v39 = vpop.eup %2923  ;;  %v2017_v38 = vadd.f32 1.0, %v2922_v48 }
 0xa4e   :  { %v2016_v49 = vadd.f32 1.0, %v2924_v39 }
 0xa4f   :  { %v2019_v51 = vmul.f32 %v2017_v38, %v2003_v26 }
 0xa50   :  { %v2018_v50 = vmul.f32 %v2016_v49, %v2002_v40 }
 0xa52   :  { %2601 = vmatprep.mubr.f32.mxu0 %v2018_v50 }
 0xa53   :  { %2602 = vmatmul.mubr.f32.vlgmr.msra.gmra.mrb[38].mxu0 %v2019_v51 }
 0xb26   :  { %v2603_v53 = vpop.f32.mrb[38].mxu0 }
 0xb27   :  { %v2112_v54 = vadd.f32 %v2603_v53, %v2039_v52  ;;  %v2106_v55 = vpop.f32.mrb[39].mxu0 }
 0xb28   :  { %v2107_v58 = vadd.f32 %v2106_v55, %v2039_v52 }
 0xb29   :  { %v2116_v60 = vadd.f32 %v3468_v22, %v2112_v54 }
 0xb2a   :  { %v2115_v61 = vadd.f32 %v3470_v24, %v2107_v58 }
 0xb2b   :  { %2118 = vst.msk [vmem:[#allocation2 + $0x8] sm:$0xff] %vm33_vm0, %v2116_v60 }
 0xb2c   :  { %2117 = vst.msk [vmem:[#allocation2] sm:$0xff] %vm33_vm0, %v2115_v61 }
 0xb2d   :  { %2939 = shalt.err (!%p2936_p4)
}
 0xb2e   :  { %s2940_s1 = scalar_lea.hbm %s3580_s4, 256 }
 0xb2f   :  { %p2941_p5 = scmp.ne.s32.totalorder %s3580_s4, %s2940_s1  ;;  %p2944_p6 = scmp.lt.u32.totalorder %s2940_s1, %s3580_s4 }
 0xb31   :  { %p2946_p7 = pnand %p2944_p6, %p2941_p5 }
 0xb33   :  { %2949 = shalt.err (!%p2946_p7)
}
 0xb34   :  { %s2955_s17 = smov 128   ;;  %s2956_s18 = smov 8  }
 0xb35   :  { %2130 = dma.vmem_to_hbm [thread:$0]  %s2125_s3, 256, %s3580_s4, [#allocation3], %s2955_s17, %s2955_s17, %s2956_s18  }
 0xb36   :  { %2950 = dma.done.wait [#allocation3], 256  }
 0xb37   :  { %2951 = vsyncadd [#allocation3], 4294967040 }
 0xb38   :  { %2134 = vsyncpa [#allocation3], 1 }

</bundles_post_ra>
